<compile_context>
chip_gen: v5e
topology: v5e:2x2
jax: 0.10.0
libtpu: 0.0.40
codegen_flags: <defaults>
</compile_context>

<pallas_src>
import functools
import math

import jax
import jax.numpy as jnp
from jax import lax
from jax.experimental import pallas as pl
from jax.experimental.pallas import tpu as pltpu


def _pick_tile(dim, candidates):
    """Largest candidate tile that evenly divides dim; else the full dim
    (a block equal to the full array dim is always legal)."""
    for c in candidates:
        if c <= dim and dim % c == 0:
            return c
    return dim


# ----------------------- dense: tiled matmul + bias + activation -----------------------

def _dense_kernel(x_ref, w_ref, b_ref, o_ref, acc_ref, *, activation):
    k = pl.program_id(2)

    @pl.when(k == 0)
    def _():
        acc_ref[...] = jnp.zeros_like(acc_ref)

    acc_ref[...] += jnp.dot(x_ref[...], w_ref[...],
                            preferred_element_type=jnp.float32)

    @pl.when(k == pl.num_programs(2) - 1)
    def _():
        y = acc_ref[...] + b_ref[...]
        if activation == "gelu":
            # TODO(synk): BERT uses the exact erf-GELU; tanh approximation used here.
            c = 0.7978845608028654  # sqrt(2/pi)
            y = 0.5 * y * (1.0 + jnp.tanh(c * (y + 0.044715 * y * y * y)))
        elif activation == "tanh":
            y = jnp.tanh(y)
        o_ref[...] = y.astype(o_ref.dtype)


def dense(x, w, b, activation=None, out_dtype=jnp.bfloat16):
    """y = act(x @ w + b); bf16 MXU inputs, f32 accumulation, M/N/K tiled."""
    M, K = x.shape
    _, N = w.shape
    xb = x.astype(jnp.bfloat16)
    wb = w.astype(jnp.bfloat16)
    bf = b.astype(jnp.float32).reshape(1, N)

    tm = _pick_tile(M, (256, 128, 64, 32, 16, 8))
    tn = _pick_tile(N, (512, 384, 256, 128))
    tk = _pick_tile(K, (512, 384, 256, 128))
    grid = (M // tm, N // tn, K // tk)

    return pl.pallas_call(
        functools.partial(_dense_kernel, activation=activation),
        out_shape=jax.ShapeDtypeStruct((M, N), out_dtype),
        grid=grid,
        in_specs=[
            pl.BlockSpec((tm, tk), lambda i, j, k: (i, k)),
            pl.BlockSpec((tk, tn), lambda i, j, k: (k, j)),
            pl.BlockSpec((1, tn), lambda i, j, k: (0, j)),
        ],
        out_specs=pl.BlockSpec((tm, tn), lambda i, j, k: (i, j)),
        scratch_shapes=[pltpu.VMEM((tm, tn), jnp.float32)],
        compiler_params=pltpu.CompilerParams(
            dimension_semantics=("parallel", "parallel", "arbitrary")),
    )(xb, wb, bf)


# ----------------------- layernorm (row-tiled, optional fused residual) -----------------------

def _ln_finish(x, g_ref, b_ref, o_ref, eps):
    mean = jnp.mean(x, axis=-1, keepdims=True)
    xc = x - mean
    var = jnp.mean(xc * xc, axis=-1, keepdims=True)
    inv = lax.rsqrt(var + eps)
    o_ref[...] = (xc * inv * g_ref[...] + b_ref[...]).astype(o_ref.dtype)


def _ln_kernel(x_ref, g_ref, b_ref, o_ref, *, eps):
    _ln_finish(x_ref[...].astype(jnp.float32), g_ref, b_ref, o_ref, eps)


def _ln_res_kernel(x_ref, r_ref, g_ref, b_ref, o_ref, *, eps):
    x = x_ref[...].astype(jnp.float32) + r_ref[...].astype(jnp.float32)
    _ln_finish(x, g_ref, b_ref, o_ref, eps)


def layernorm(x, gamma, beta, residual=None, eps=1e-12, out_dtype=jnp.bfloat16):
    M, H = x.shape
    tm = _pick_tile(M, (1024, 512, 256, 128, 64, 32, 16, 8))
    grid = (M // tm,)
    g = gamma.astype(jnp.float32).reshape(1, H)
    b = beta.astype(jnp.float32).reshape(1, H)
    row_spec = pl.BlockSpec((tm, H), lambda i: (i, 0))
    vec_spec = pl.BlockSpec((1, H), lambda i: (0, 0))

    if residual is None:
        kernel = functools.partial(_ln_kernel, eps=eps)
        in_specs = [row_spec, vec_spec, vec_spec]
        args = (x, g, b)
    else:
        kernel = functools.partial(_ln_res_kernel, eps=eps)
        in_specs = [row_spec, row_spec, vec_spec, vec_spec]
        args = (x, residual, g, b)

    return pl.pallas_call(
        kernel,
        out_shape=jax.ShapeDtypeStruct((M, H), out_dtype),
        grid=grid,
        in_specs=in_specs,
        out_specs=row_spec,
        compiler_params=pltpu.CompilerParams(dimension_semantics=("parallel",)),
    )(*args)


# ----------------------- attention (multi-head block per grid step) -----------------------

def _attention_kernel(q_ref, k_ref, v_ref, m_ref, o_ref, *, scale):
    q = q_ref[...] * scale                    # fold 1/sqrt(Dh) into q: (hpb,S,Dh)
    k = k_ref[...]
    v = v_ref[...]
    s = jnp.einsum("hqd,hkd->hqk", q, k, preferred_element_type=jnp.float32)
    s = s + m_ref[...]                        # (1,S) additive mask over key axis
    s = s - jnp.max(s, axis=-1, keepdims=True)
    p = jnp.exp(s)
    l = jnp.sum(p, axis=-1, keepdims=True)
    acc = jnp.einsum("hqk,hkd->hqd", p.astype(v.dtype), v,
                     preferred_element_type=jnp.float32)
    o_ref[...] = (acc * pl.reciprocal(l, approx=True)).astype(o_ref.dtype)


def attention(q, k, v, add_mask):
    """q,k,v: (B, nH, S, Dh) bf16; add_mask: (B, 1, S) f32 additive mask."""
    # TODO(synk): switch to flash-style KV-tiled online softmax for long S (>= 2048).
    B, nH, S, Dh = q.shape
    hpb = 4 if nH % 4 == 0 else (2 if nH % 2 == 0 else 1)   # heads per grid step
    scale = 1.0 / math.sqrt(Dh)
    qkv_spec = lambda: pl.BlockSpec((None, hpb, S, Dh), lambda b, h: (b, h, 0, 0))
    return pl.pallas_call(
        functools.partial(_attention_kernel, scale=scale),
        out_shape=jax.ShapeDtypeStruct((B, nH, S, Dh), jnp.bfloat16),
        grid=(B, nH // hpb),
        in_specs=[
            qkv_spec(), qkv_spec(), qkv_spec(),
            pl.BlockSpec((None, 1, S), lambda b, h: (b, 0, 0)),
        ],
        out_specs=pl.BlockSpec((None, hpb, S, Dh), lambda b, h: (b, h, 0, 0)),
        compiler_params=pltpu.CompilerParams(
            dimension_semantics=("parallel", "parallel")),
    )(q, k, v, add_mask)


# ----------------------------- model (glue) -----------------------------

def bert_stance_forward(params, input_ids, attention_mask, cfg):
    B, S = input_ids.shape
    H = cfg["hidden"]
    nH = cfg["heads"]
    Dh = H // nH
    NL = cfg["num_labels"]

    # embeddings: word + position + token_type(=0), then LayerNorm (gather = glue)
    we = jnp.take(params["word_emb"], input_ids, axis=0)        # (B,S,H)
    pe = params["pos_emb"][:S][None, :, :]                      # (1,S,H)
    te = params["type_emb"][0][None, None, :]                   # (1,1,H)
    h = layernorm((we + pe + te).reshape(B * S, H),
                  params["emb_ln_g"], params["emb_ln_b"])       # bf16 (B*S,H)

    # BERT-style extended additive attention mask
    add_mask = ((1.0 - attention_mask.astype(jnp.float32)) * -1e9).reshape(B, 1, S)

    def split_heads(t):
        return t.reshape(B, S, nH, Dh).transpose(0, 2, 1, 3)    # (B,nH,S,Dh)

    for lp in params["layers"]:
        # --- self-attention block: fused QKV projection (one MXU pass, N=3H) ---
        wqkv = jnp.concatenate([lp["wq"], lp["wk"], lp["wv"]], axis=1)
        bqkv = jnp.concatenate([lp["bq"], lp["bk"], lp["bv"]])
        qkv = dense(h, wqkv, bqkv)                              # (B*S, 3H)
        q, k, v = qkv[:, :H], qkv[:, H:2 * H], qkv[:, 2 * H:]

        ctx = attention(split_heads(q), split_heads(k), split_heads(v), add_mask)
        ctx = ctx.transpose(0, 2, 1, 3).reshape(B * S, H)
        attn_out = dense(ctx, lp["wo"], lp["bo"])
        h = layernorm(attn_out, lp["ln1_g"], lp["ln1_b"], residual=h)   # fused residual

        # --- feed-forward block ---
        inter = dense(h, lp["wi"], lp["bi"], activation="gelu")
        ffn_out = dense(inter, lp["wf"], lp["bf"])
        h = layernorm(ffn_out, lp["ln2_g"], lp["ln2_b"], residual=h)    # fused residual

    h = h.reshape(B, S, H)
    # pooler: tanh(Linear(hidden_state of [CLS] token))
    pooled = dense(h[:, 0, :], params["pool_w"], params["pool_b"],
                   activation="tanh", out_dtype=jnp.float32)

    # classifier head: pad num_labels to a lane-dense 128-wide output, slice after
    n_pad = max(128, ((NL + 127) // 128) * 128)
    cls_w = jnp.zeros((H, n_pad), jnp.float32).at[:, :NL].set(params["cls_w"])
    cls_b = jnp.zeros((n_pad,), jnp.float32).at[:NL].set(params["cls_b"])
    logits = dense(pooled, cls_w, cls_b, out_dtype=jnp.float32)[:, :NL]
    return logits


def init_params(key, cfg):
    H, I = cfg["hidden"], cfg["inter"]
    V, P = cfg["vocab"], cfg["max_pos"]
    L, NL = cfg["layers"], cfg["num_labels"]

    def nrm(k, shape, scale=0.02):
        return scale * jax.random.normal(k, shape, dtype=jnp.float32)

    keys = jax.random.split(key, 8 + L)
    params = {
        "word_emb": nrm(keys[0], (V, H)),
        "pos_emb": nrm(keys[1], (P, H)),
        "type_emb": nrm(keys[2], (2, H)),
        "emb_ln_g": jnp.ones((H,), jnp.float32),
        "emb_ln_b": jnp.zeros((H,), jnp.float32),
        "pool_w": nrm(keys[3], (H, H)),
        "pool_b": jnp.zeros((H,), jnp.float32),
        "cls_w": nrm(keys[4], (H, NL)),
        "cls_b": jnp.zeros((NL,), jnp.float32),
        "layers": [],
    }
    for l in range(L):
        lk = jax.random.split(keys[8 + l], 6)
        params["layers"].append({
            "wq": nrm(lk[0], (H, H)), "bq": jnp.zeros((H,), jnp.float32),
            "wk": nrm(lk[1], (H, H)), "bk": jnp.zeros((H,), jnp.float32),
            "wv": nrm(lk[2], (H, H)), "bv": jnp.zeros((H,), jnp.float32),
            "wo": nrm(lk[3], (H, H)), "bo": jnp.zeros((H,), jnp.float32),
            "ln1_g": jnp.ones((H,), jnp.float32),
            "ln1_b": jnp.zeros((H,), jnp.float32),
            "wi": nrm(lk[4], (H, I)), "bi": jnp.zeros((I,), jnp.float32),
            "wf": nrm(lk[5], (I, H)), "bf": jnp.zeros((H,), jnp.float32),
            "ln2_g": jnp.ones((H,), jnp.float32),
            "ln2_b": jnp.zeros((H,), jnp.float32),
        })
    return params


if __name__ == "__main__":
    # small synthetic "BERT" config (hidden=32, 2 heads, 2 layers) + 3 labels
    cfg = dict(hidden=32, heads=2, inter=64, vocab=100, max_pos=16,
               layers=2, num_labels=3)
    B, S = 2, 8

    key = jax.random.PRNGKey(0)
    pkey, ikey = jax.random.split(key)
    params = init_params(pkey, cfg)

    input_ids = jax.random.randint(ikey, (B, S), 0, cfg["vocab"], dtype=jnp.int32)
    attention_mask = jnp.array([[1, 1, 1, 1, 1, 1, 1, 1],
                                [1, 1, 1, 1, 1, 1, 0, 0]], dtype=jnp.int32)

    fwd = jax.jit(functools.partial(bert_stance_forward, cfg=cfg))
    logits = fwd(params, input_ids, attention_mask)
    jax.block_until_ready(logits)
    assert logits.shape == (B, cfg["num_labels"]) and logits.dtype == jnp.float32
    print("KERNEL_OK")
</pallas_src>

<mosaic_0001>
module attributes {stable_mosaic.version = 11 : i64} {
  func.func @_ln_kernel(%arg0: i32, %arg1: memref<16x32xf32, #tpu.memory_space<vmem>>, %arg2: memref<1x32xf32, #tpu.memory_space<vmem>>, %arg3: memref<1x32xf32, #tpu.memory_space<vmem>>, %arg4: memref<16x32xbf16, #tpu.memory_space<vmem>>) attributes {dimension_semantics = [#tpu.dimension_semantics<parallel>], iteration_bounds = array<i64: 1>, scalar_prefetch = 0 : i64, scratch_operands = 0 : i64, tpu.core_type = #tpu.core_type<tc>, window_params = [{transform_indices = @transform_0, window_bounds = array<i64: 16, 32>}, {pipeline_mode = #tpu.pipeline_mode<synchronous>, transform_indices = @transform_1, window_bounds = array<i64: 1, 32>}, {pipeline_mode = #tpu.pipeline_mode<synchronous>, transform_indices = @transform_2, window_bounds = array<i64: 1, 32>}, {transform_indices = @transform_3, window_bounds = array<i64: 16, 32>}]} {
    %c0 = arith.constant 0 : index
    %c0_0 = arith.constant 0 : index
    %0 = vector.load %arg1[%c0, %c0_0] : memref<16x32xf32, #tpu.memory_space<vmem>>, vector<16x32xf32>
    %cst = arith.constant dense<0.000000e+00> : vector<16xf32>
    %1 = vector.multi_reduction <add>, %0, %cst [1] : vector<16x32xf32> to vector<16xf32>
    %2 = vector.shape_cast %1 : vector<16xf32> to vector<16x1xf32>
    %cst_1 = arith.constant 3.200000e+01 : f32
    %3 = vector.broadcast %cst_1 : f32 to vector<16x1xf32>
    %4 = arith.divf %2, %3 : vector<16x1xf32>
    %5 = vector.broadcast %4 : vector<16x1xf32> to vector<16x32xf32>
    %6 = arith.subf %0, %5 : vector<16x32xf32>
    %7 = arith.mulf %6, %6 : vector<16x32xf32>
    %cst_2 = arith.constant dense<0.000000e+00> : vector<16xf32>
    %8 = vector.multi_reduction <add>, %7, %cst_2 [1] : vector<16x32xf32> to vector<16xf32>
    %9 = vector.shape_cast %8 : vector<16xf32> to vector<16x1xf32>
    %cst_3 = arith.constant 3.200000e+01 : f32
    %10 = vector.broadcast %cst_3 : f32 to vector<16x1xf32>
    %11 = arith.divf %9, %10 : vector<16x1xf32>
    %cst_4 = arith.constant 9.99999996E-13 : f32
    %12 = vector.broadcast %cst_4 : f32 to vector<16x1xf32>
    %13 = arith.addf %11, %12 : vector<16x1xf32>
    %14 = math.rsqrt %13 : vector<16x1xf32>
    %15 = vector.broadcast %14 : vector<16x1xf32> to vector<16x32xf32>
    %16 = arith.mulf %6, %15 : vector<16x32xf32>
    %c0_5 = arith.constant 0 : index
    %c0_6 = arith.constant 0 : index
    %17 = vector.load %arg2[%c0_5, %c0_6] : memref<1x32xf32, #tpu.memory_space<vmem>>, vector<1x32xf32>
    %18 = vector.broadcast %17 : vector<1x32xf32> to vector<16x32xf32>
    %19 = arith.mulf %16, %18 : vector<16x32xf32>
    %c0_7 = arith.constant 0 : index
    %c0_8 = arith.constant 0 : index
    %20 = vector.load %arg3[%c0_7, %c0_8] : memref<1x32xf32, #tpu.memory_space<vmem>>, vector<1x32xf32>
    %21 = vector.broadcast %20 : vector<1x32xf32> to vector<16x32xf32>
    %22 = arith.addf %19, %21 : vector<16x32xf32>
    %23 = arith.truncf %22 : vector<16x32xf32> to vector<16x32xbf16>
    %c0_9 = arith.constant 0 : index
    %c0_10 = arith.constant 0 : index
    %24 = vector.load %arg4[%c0_9, %c0_10] : memref<16x32xbf16, #tpu.memory_space<vmem>>, vector<16x32xbf16>
    tpu.vector_store %arg4[%c0_9, %c0_10], %23 {strides = array<i32>} : memref<16x32xbf16, #tpu.memory_space<vmem>>, vector<16x32xbf16>,
    return
  }
  func.func @transform_0(%arg0: i32) -> (i32, i32) {
    %c0_i32 = arith.constant 0 : i32
    %c0_i32_0 = arith.constant 0 : i32
    return %arg0, %c0_i32 : i32, i32
  }
  func.func @transform_1(%arg0: i32) -> (i32, i32) {
    %c0_i32 = arith.constant 0 : i32
    %c0_i32_0 = arith.constant 0 : i32
    %c0_i32_1 = arith.constant 0 : i32
    return %c0_i32, %c0_i32_0 : i32, i32
  }
  func.func @transform_2(%arg0: i32) -> (i32, i32) {
    %c0_i32 = arith.constant 0 : i32
    %c0_i32_0 = arith.constant 0 : i32
    %c0_i32_1 = arith.constant 0 : i32
    return %c0_i32, %c0_i32_0 : i32, i32
  }
  func.func @transform_3(%arg0: i32) -> (i32, i32) {
    %c0_i32 = arith.constant 0 : i32
    %c0_i32_0 = arith.constant 0 : i32
    return %arg0, %c0_i32 : i32, i32
  }
}

module attributes {stable_mosaic.version = 11 : i64} {
  func.func @_dense_kernel(%arg0: i32, %arg1: i32, %arg2: i32, %arg3: memref<16x32xbf16, #tpu.memory_space<vmem>>, %arg4: memref<32x96xbf16, #tpu.memory_space<vmem>>, %arg5: memref<1x96xf32, #tpu.memory_space<vmem>>, %arg6: memref<16x96xbf16, #tpu.memory_space<vmem>>, %arg7: memref<16x96xf32, #tpu.memory_space<vmem>>) attributes {dimension_semantics = [#tpu.dimension_semantics<parallel>, #tpu.dimension_semantics<parallel>, #tpu.dimension_semantics<arbitrary>], iteration_bounds = array<i64: 1, 1, 1>, scalar_prefetch = 0 : i64, scratch_operands = 1 : i64, tpu.core_type = #tpu.core_type<tc>, window_params = [{transform_indices = @transform_0, window_bounds = array<i64: 16, 32>}, {transform_indices = @transform_1, window_bounds = array<i64: 32, 96>}, {transform_indices = @transform_2, window_bounds = array<i64: 1, 96>}, {transform_indices = @transform_3, window_bounds = array<i64: 16, 96>}]} {
    %c0_i32 = arith.constant 0 : i32
    %0 = arith.cmpi eq, %arg2, %c0_i32 : i32
    %1 = arith.extui %0 : i1 to i32
    %c0_i32_0 = arith.constant 0 : i32
    %2 = arith.cmpi ne, %1, %c0_i32_0 : i32
    scf.if %2 {
      %cst_10 = arith.constant 0.000000e+00 : f32
      %12 = vector.broadcast %cst_10 : f32 to vector<16x96xf32>
      %c0_11 = arith.constant 0 : index
      %c0_12 = arith.constant 0 : index
      %13 = vector.load %arg7[%c0_11, %c0_12] : memref<16x96xf32, #tpu.memory_space<vmem>>, vector<16x96xf32>
      tpu.vector_store %arg7[%c0_11, %c0_12], %12 {strides = array<i32>} : memref<16x96xf32, #tpu.memory_space<vmem>>, vector<16x96xf32>,
    } else {
    }
    %c0 = arith.constant 0 : index
    %c0_1 = arith.constant 0 : index
    %3 = vector.load %arg7[%c0, %c0_1] : memref<16x96xf32, #tpu.memory_space<vmem>>, vector<16x96xf32>
    %c0_2 = arith.constant 0 : index
    %c0_3 = arith.constant 0 : index
    %4 = vector.load %arg3[%c0_2, %c0_3] : memref<16x32xbf16, #tpu.memory_space<vmem>>, vector<16x32xbf16>
    %c0_4 = arith.constant 0 : index
    %c0_5 = arith.constant 0 : index
    %5 = vector.load %arg4[%c0_4, %c0_5] : memref<32x96xbf16, #tpu.memory_space<vmem>>, vector<32x96xbf16>
    %cst = arith.constant dense<0.000000e+00> : vector<16x96xf32>
    %6 = tpu.matmul %4, %5, %cst {dimension_numbers = #tpu.dot_dimension_numbers<[1], [0], [0], [1], [0, 0, 1, 1], [], []>} : vector<16x32xbf16>, vector<32x96xbf16>, vector<16x96xf32> -> vector<16x96xf32>
    %7 = arith.addf %3, %6 : vector<16x96xf32>
    %c0_6 = arith.constant 0 : index
    %c0_7 = arith.constant 0 : index
    %8 = vector.load %arg7[%c0_6, %c0_7] : memref<16x96xf32, #tpu.memory_space<vmem>>, vector<16x96xf32>
    tpu.vector_store %arg7[%c0_6, %c0_7], %7 {strides = array<i32>} : memref<16x96xf32, #tpu.memory_space<vmem>>, vector<16x96xf32>,
    %c0_i32_8 = arith.constant 0 : i32
    %9 = arith.cmpi eq, %arg2, %c0_i32_8 : i32
    %10 = arith.extui %9 : i1 to i32
    %c0_i32_9 = arith.constant 0 : i32
    %11 = arith.cmpi ne, %10, %c0_i32_9 : i32
    scf.if %11 {
      %c0_10 = arith.constant 0 : index
      %c0_11 = arith.constant 0 : index
      %12 = vector.load %arg7[%c0_10, %c0_11] : memref<16x96xf32, #tpu.memory_space<vmem>>, vector<16x96xf32>
      %c0_12 = arith.constant 0 : index
      %c0_13 = arith.constant 0 : index
      %13 = vector.load %arg5[%c0_12, %c0_13] : memref<1x96xf32, #tpu.memory_space<vmem>>, vector<1x96xf32>
      %14 = vector.broadcast %13 : vector<1x96xf32> to vector<16x96xf32>
      %15 = arith.addf %12, %14 : vector<16x96xf32>
      %16 = arith.truncf %15 : vector<16x96xf32> to vector<16x96xbf16>
      %c0_14 = arith.constant 0 : index
      %c0_15 = arith.constant 0 : index
      %17 = vector.load %arg6[%c0_14, %c0_15] : memref<16x96xbf16, #tpu.memory_space<vmem>>, vector<16x96xbf16>
      tpu.vector_store %arg6[%c0_14, %c0_15], %16 {strides = array<i32>} : memref<16x96xbf16, #tpu.memory_space<vmem>>, vector<16x96xbf16>,
    } else {
    }
    return
  }
  func.func @transform_0(%arg0: i32, %arg1: i32, %arg2: i32) -> (i32, i32) {
    %c0_i32 = arith.constant 0 : i32
    return %arg0, %arg2 : i32, i32
  }
  func.func @transform_1(%arg0: i32, %arg1: i32, %arg2: i32) -> (i32, i32) {
    %c0_i32 = arith.constant 0 : i32
    return %arg2, %arg1 : i32, i32
  }
  func.func @transform_2(%arg0: i32, %arg1: i32, %arg2: i32) -> (i32, i32) {
    %c0_i32 = arith.constant 0 : i32
    %c0_i32_0 = arith.constant 0 : i32
    return %c0_i32, %arg1 : i32, i32
  }
  func.func @transform_3(%arg0: i32, %arg1: i32, %arg2: i32) -> (i32, i32) {
    %c0_i32 = arith.constant 0 : i32
    return %arg0, %arg1 : i32, i32
  }
}

module attributes {stable_mosaic.version = 11 : i64} {
  func.func @_attention_kernel(%arg0: i32, %arg1: i32, %arg2: memref<1x2x8x16xbf16, #tpu.memory_space<vmem>>, %arg3: memref<1x2x8x16xbf16, #tpu.memory_space<vmem>>, %arg4: memref<1x2x8x16xbf16, #tpu.memory_space<vmem>>, %arg5: memref<1x1x8xf32, #tpu.memory_space<vmem>>, %arg6: memref<1x2x8x16xbf16, #tpu.memory_space<vmem>>) attributes {dimension_semantics = [#tpu.dimension_semantics<parallel>, #tpu.dimension_semantics<parallel>], iteration_bounds = array<i64: 2, 1>, scalar_prefetch = 0 : i64, scratch_operands = 0 : i64, tpu.core_type = #tpu.core_type<tc>, window_params = [{transform_indices = @transform_0, window_bounds = array<i64: 1, 2, 8, 16>}, {transform_indices = @transform_1, window_bounds = array<i64: 1, 2, 8, 16>}, {transform_indices = @transform_2, window_bounds = array<i64: 1, 2, 8, 16>}, {transform_indices = @transform_3, window_bounds = array<i64: 1, 1, 8>}, {transform_indices = @transform_4, window_bounds = array<i64: 1, 2, 8, 16>}]} {
    %c0 = arith.constant 0 : index
    %c0_0 = arith.constant 0 : index
    %c0_1 = arith.constant 0 : index
    %c0_2 = arith.constant 0 : index
    %0 = vector.load %arg2[%c0, %c0_0, %c0_1, %c0_2] : memref<1x2x8x16xbf16, #tpu.memory_space<vmem>>, vector<1x2x8x16xbf16>
    %1 = vector.shape_cast %0 : vector<1x2x8x16xbf16> to vector<2x8x16xbf16>
    %cst = arith.constant 2.500000e-01 : bf16
    %2 = vector.broadcast %cst : bf16 to vector<2x8x16xbf16>
    %3 = arith.mulf %1, %2 : vector<2x8x16xbf16>
    %c0_3 = arith.constant 0 : index
    %c0_4 = arith.constant 0 : index
    %c0_5 = arith.constant 0 : index
    %c0_6 = arith.constant 0 : index
    %4 = vector.load %arg3[%c0_3, %c0_4, %c0_5, %c0_6] : memref<1x2x8x16xbf16, #tpu.memory_space<vmem>>, vector<1x2x8x16xbf16>
    %5 = vector.shape_cast %4 : vector<1x2x8x16xbf16> to vector<2x8x16xbf16>
    %c0_7 = arith.constant 0 : index
    %c0_8 = arith.constant 0 : index
    %c0_9 = arith.constant 0 : index
    %c0_10 = arith.constant 0 : index
    %6 = vector.load %arg4[%c0_7, %c0_8, %c0_9, %c0_10] : memref<1x2x8x16xbf16, #tpu.memory_space<vmem>>, vector<1x2x8x16xbf16>
    %7 = vector.shape_cast %6 : vector<1x2x8x16xbf16> to vector<2x8x16xbf16>
    "tpu.trace_start"() <{level = 10 : i32, message = "hqd,hkd->hqk"}> : () -> ()
    %cst_11 = arith.constant dense<0.000000e+00> : vector<2x8x8xf32>
    %8 = tpu.matmul %3, %5, %cst_11 {dimension_numbers = #tpu.dot_dimension_numbers<[2], [2], [1], [1], [0, 0, 0, 1, 1, 1], [0], [0]>} : vector<2x8x16xbf16>, vector<2x8x16xbf16>, vector<2x8x8xf32> -> vector<2x8x8xf32>
    "tpu.trace_stop"() : () -> ()
    %c0_12 = arith.constant 0 : index
    %c0_13 = arith.constant 0 : index
    %c0_14 = arith.constant 0 : index
    %9 = vector.load %arg5[%c0_12, %c0_13, %c0_14] : memref<1x1x8xf32, #tpu.memory_space<vmem>>, vector<1x1x8xf32>
    %10 = vector.shape_cast %9 : vector<1x1x8xf32> to vector<1x8xf32>
    %11 = vector.shape_cast %10 : vector<1x8xf32> to vector<1x1x8xf32>
    %12 = vector.broadcast %11 : vector<1x1x8xf32> to vector<2x8x8xf32>
    %13 = arith.addf %8, %12 : vector<2x8x8xf32>
    %cst_15 = arith.constant dense<0xFF800000> : vector<2x8xf32>
    %14 = vector.multi_reduction <maximumf>, %13, %cst_15 [2] : vector<2x8x8xf32> to vector<2x8xf32>
    %15 = vector.shape_cast %14 : vector<2x8xf32> to vector<2x8x1xf32>
    %16 = vector.broadcast %15 : vector<2x8x1xf32> to vector<2x8x8xf32>
    %17 = arith.subf %13, %16 : vector<2x8x8xf32>
    %18 = math.exp %17 : vector<2x8x8xf32>
    %cst_16 = arith.constant dense<0.000000e+00> : vector<2x8xf32>
    %19 = vector.multi_reduction <add>, %18, %cst_16 [2] : vector<2x8x8xf32> to vector<2x8xf32>
    %20 = vector.shape_cast %19 : vector<2x8xf32> to vector<2x8x1xf32>
    %21 = arith.truncf %18 : vector<2x8x8xf32> to vector<2x8x8xbf16>
    "tpu.trace_start"() <{level = 10 : i32, message = "hqk,hkd->hqd"}> : () -> ()
    %cst_17 = arith.constant dense<0.000000e+00> : vector<2x8x16xf32>
    %22 = tpu.matmul %21, %7, %cst_17 {dimension_numbers = #tpu.dot_dimension_numbers<[2], [1], [1], [2], [0, 0, 0, 1, 1, 2], [0], [0]>} : vector<2x8x8xbf16>, vector<2x8x16xbf16>, vector<2x8x16xf32> -> vector<2x8x16xf32>
    "tpu.trace_stop"() : () -> ()
    %23 = tpu.reciprocal %20 {approx = true} : vector<2x8x1xf32> -> vector<2x8x1xf32>
    %24 = vector.broadcast %23 : vector<2x8x1xf32> to vector<2x8x16xf32>
    %25 = arith.mulf %22, %24 : vector<2x8x16xf32>
    %26 = arith.truncf %25 : vector<2x8x16xf32> to vector<2x8x16xbf16>
    %c0_18 = arith.constant 0 : index
    %c0_19 = arith.constant 0 : index
    %c0_20 = arith.constant 0 : index
    %c0_21 = arith.constant 0 : index
    %27 = vector.load %arg6[%c0_18, %c0_19, %c0_20, %c0_21] : memref<1x2x8x16xbf16, #tpu.memory_space<vmem>>, vector<1x2x8x16xbf16>
    %28 = vector.shape_cast %27 : vector<1x2x8x16xbf16> to vector<2x8x16xbf16>
    %29 = vector.shape_cast %26 : vector<2x8x16xbf16> to vector<1x2x8x16xbf16>
    tpu.vector_store %arg6[%c0_18, %c0_19, %c0_20, %c0_21], %29 {strides = array<i32>} : memref<1x2x8x16xbf16, #tpu.memory_space<vmem>>, vector<1x2x8x16xbf16>,
    return
  }
  func.func @transform_0(%arg0: i32, %arg1: i32) -> (i32, i32, i32, i32) {
    %c0_i32 = arith.constant 0 : i32
    %c0_i32_0 = arith.constant 0 : i32
    %c0_i32_1 = arith.constant 0 : i32
    return %arg0, %arg1, %c0_i32, %c0_i32_0 : i32, i32, i32, i32
  }
  func.func @transform_1(%arg0: i32, %arg1: i32) -> (i32, i32, i32, i32) {
    %c0_i32 = arith.constant 0 : i32
    %c0_i32_0 = arith.constant 0 : i32
    %c0_i32_1 = arith.constant 0 : i32
    return %arg0, %arg1, %c0_i32, %c0_i32_0 : i32, i32, i32, i32
  }
  func.func @transform_2(%arg0: i32, %arg1: i32) -> (i32, i32, i32, i32) {
    %c0_i32 = arith.constant 0 : i32
    %c0_i32_0 = arith.constant 0 : i32
    %c0_i32_1 = arith.constant 0 : i32
    return %arg0, %arg1, %c0_i32, %c0_i32_0 : i32, i32, i32, i32
  }
  func.func @transform_3(%arg0: i32, %arg1: i32) -> (i32, i32, i32) {
    %c0_i32 = arith.constant 0 : i32
    %c0_i32_0 = arith.constant 0 : i32
    %c0_i32_1 = arith.constant 0 : i32
    return %arg0, %c0_i32, %c0_i32_0 : i32, i32, i32
  }
  func.func @transform_4(%arg0: i32, %arg1: i32) -> (i32, i32, i32, i32) {
    %c0_i32 = arith.constant 0 : i32
    %c0_i32_0 = arith.constant 0 : i32
    %c0_i32_1 = arith.constant 0 : i32
    return %arg0, %arg1, %c0_i32, %c0_i32_0 : i32, i32, i32, i32
  }
}

module attributes {stable_mosaic.version = 11 : i64} {
  func.func @_dense_kernel(%arg0: i32, %arg1: i32, %arg2: i32, %arg3: memref<16x32xbf16, #tpu.memory_space<vmem>>, %arg4: memref<32x32xbf16, #tpu.memory_space<vmem>>, %arg5: memref<1x32xf32, #tpu.memory_space<vmem>>, %arg6: memref<16x32xbf16, #tpu.memory_space<vmem>>, %arg7: memref<16x32xf32, #tpu.memory_space<vmem>>) attributes {dimension_semantics = [#tpu.dimension_semantics<parallel>, #tpu.dimension_semantics<parallel>, #tpu.dimension_semantics<arbitrary>], iteration_bounds = array<i64: 1, 1, 1>, scalar_prefetch = 0 : i64, scratch_operands = 1 : i64, tpu.core_type = #tpu.core_type<tc>, window_params = [{transform_indices = @transform_0, window_bounds = array<i64: 16, 32>}, {transform_indices = @transform_1, window_bounds = array<i64: 32, 32>}, {transform_indices = @transform_2, window_bounds = array<i64: 1, 32>}, {transform_indices = @transform_3, window_bounds = array<i64: 16, 32>}]} {
    %c0_i32 = arith.constant 0 : i32
    %0 = arith.cmpi eq, %arg2, %c0_i32 : i32
    %1 = arith.extui %0 : i1 to i32
    %c0_i32_0 = arith.constant 0 : i32
    %2 = arith.cmpi ne, %1, %c0_i32_0 : i32
    scf.if %2 {
      %cst_10 = arith.constant 0.000000e+00 : f32
      %12 = vector.broadcast %cst_10 : f32 to vector<16x32xf32>
      %c0_11 = arith.constant 0 : index
      %c0_12 = arith.constant 0 : index
      %13 = vector.load %arg7[%c0_11, %c0_12] : memref<16x32xf32, #tpu.memory_space<vmem>>, vector<16x32xf32>
      tpu.vector_store %arg7[%c0_11, %c0_12], %12 {strides = array<i32>} : memref<16x32xf32, #tpu.memory_space<vmem>>, vector<16x32xf32>,
    } else {
    }
    %c0 = arith.constant 0 : index
    %c0_1 = arith.constant 0 : index
    %3 = vector.load %arg7[%c0, %c0_1] : memref<16x32xf32, #tpu.memory_space<vmem>>, vector<16x32xf32>
    %c0_2 = arith.constant 0 : index
    %c0_3 = arith.constant 0 : index
    %4 = vector.load %arg3[%c0_2, %c0_3] : memref<16x32xbf16, #tpu.memory_space<vmem>>, vector<16x32xbf16>
    %c0_4 = arith.constant 0 : index
    %c0_5 = arith.constant 0 : index
    %5 = vector.load %arg4[%c0_4, %c0_5] : memref<32x32xbf16, #tpu.memory_space<vmem>>, vector<32x32xbf16>
    %cst = arith.constant dense<0.000000e+00> : vector<16x32xf32>
    %6 = tpu.matmul %4, %5, %cst {dimension_numbers = #tpu.dot_dimension_numbers<[1], [0], [0], [1], [0, 0, 1, 1], [], []>} : vector<16x32xbf16>, vector<32x32xbf16>, vector<16x32xf32> -> vector<16x32xf32>
    %7 = arith.addf %3, %6 : vector<16x32xf32>
    %c0_6 = arith.constant 0 : index
    %c0_7 = arith.constant 0 : index
    %8 = vector.load %arg7[%c0_6, %c0_7] : memref<16x32xf32, #tpu.memory_space<vmem>>, vector<16x32xf32>
    tpu.vector_store %arg7[%c0_6, %c0_7], %7 {strides = array<i32>} : memref<16x32xf32, #tpu.memory_space<vmem>>, vector<16x32xf32>,
    %c0_i32_8 = arith.constant 0 : i32
    %9 = arith.cmpi eq, %arg2, %c0_i32_8 : i32
    %10 = arith.extui %9 : i1 to i32
    %c0_i32_9 = arith.constant 0 : i32
    %11 = arith.cmpi ne, %10, %c0_i32_9 : i32
    scf.if %11 {
      %c0_10 = arith.constant 0 : index
      %c0_11 = arith.constant 0 : index
      %12 = vector.load %arg7[%c0_10, %c0_11] : memref<16x32xf32, #tpu.memory_space<vmem>>, vector<16x32xf32>
      %c0_12 = arith.constant 0 : index
      %c0_13 = arith.constant 0 : index
      %13 = vector.load %arg5[%c0_12, %c0_13] : memref<1x32xf32, #tpu.memory_space<vmem>>, vector<1x32xf32>
      %14 = vector.broadcast %13 : vector<1x32xf32> to vector<16x32xf32>
      %15 = arith.addf %12, %14 : vector<16x32xf32>
      %16 = arith.truncf %15 : vector<16x32xf32> to vector<16x32xbf16>
      %c0_14 = arith.constant 0 : index
      %c0_15 = arith.constant 0 : index
      %17 = vector.load %arg6[%c0_14, %c0_15] : memref<16x32xbf16, #tpu.memory_space<vmem>>, vector<16x32xbf16>
      tpu.vector_store %arg6[%c0_14, %c0_15], %16 {strides = array<i32>} : memref<16x32xbf16, #tpu.memory_space<vmem>>, vector<16x32xbf16>,
    } else {
    }
    return
  }
  func.func @transform_0(%arg0: i32, %arg1: i32, %arg2: i32) -> (i32, i32) {
    %c0_i32 = arith.constant 0 : i32
    return %arg0, %arg2 : i32, i32
  }
  func.func @transform_1(%arg0: i32, %arg1: i32, %arg2: i32) -> (i32, i32) {
    %c0_i32 = arith.constant 0 : i32
    return %arg2, %arg1 : i32, i32
  }
  func.func @transform_2(%arg0: i32, %arg1: i32, %arg2: i32) -> (i32, i32) {
    %c0_i32 = arith.constant 0 : i32
    %c0_i32_0 = arith.constant 0 : i32
    return %c0_i32, %arg1 : i32, i32
  }
  func.func @transform_3(%arg0: i32, %arg1: i32, %arg2: i32) -> (i32, i32) {
    %c0_i32 = arith.constant 0 : i32
    return %arg0, %arg1 : i32, i32
  }
}

module attributes {stable_mosaic.version = 11 : i64} {
  func.func @_ln_res_kernel(%arg0: i32, %arg1: memref<16x32xbf16, #tpu.memory_space<vmem>>, %arg2: memref<16x32xbf16, #tpu.memory_space<vmem>>, %arg3: memref<1x32xf32, #tpu.memory_space<vmem>>, %arg4: memref<1x32xf32, #tpu.memory_space<vmem>>, %arg5: memref<16x32xbf16, #tpu.memory_space<vmem>>) attributes {dimension_semantics = [#tpu.dimension_semantics<parallel>], iteration_bounds = array<i64: 1>, scalar_prefetch = 0 : i64, scratch_operands = 0 : i64, tpu.core_type = #tpu.core_type<tc>, window_params = [{transform_indices = @transform_0, window_bounds = array<i64: 16, 32>}, {transform_indices = @transform_1, window_bounds = array<i64: 16, 32>}, {pipeline_mode = #tpu.pipeline_mode<synchronous>, transform_indices = @transform_2, window_bounds = array<i64: 1, 32>}, {pipeline_mode = #tpu.pipeline_mode<synchronous>, transform_indices = @transform_3, window_bounds = array<i64: 1, 32>}, {transform_indices = @transform_4, window_bounds = array<i64: 16, 32>}]} {
    %c0 = arith.constant 0 : index
    %c0_0 = arith.constant 0 : index
    %0 = vector.load %arg1[%c0, %c0_0] : memref<16x32xbf16, #tpu.memory_space<vmem>>, vector<16x32xbf16>
    %1 = arith.extf %0 : vector<16x32xbf16> to vector<16x32xf32>
    %c0_1 = arith.constant 0 : index
    %c0_2 = arith.constant 0 : index
    %2 = vector.load %arg2[%c0_1, %c0_2] : memref<16x32xbf16, #tpu.memory_space<vmem>>, vector<16x32xbf16>
    %3 = arith.extf %2 : vector<16x32xbf16> to vector<16x32xf32>
    %4 = arith.addf %1, %3 : vector<16x32xf32>
    %cst = arith.constant dense<0.000000e+00> : vector<16xf32>
    %5 = vector.multi_reduction <add>, %4, %cst [1] : vector<16x32xf32> to vector<16xf32>
    %6 = vector.shape_cast %5 : vector<16xf32> to vector<16x1xf32>
    %cst_3 = arith.constant 3.200000e+01 : f32
    %7 = vector.broadcast %cst_3 : f32 to vector<16x1xf32>
    %8 = arith.divf %6, %7 : vector<16x1xf32>
    %9 = vector.broadcast %8 : vector<16x1xf32> to vector<16x32xf32>
    %10 = arith.subf %4, %9 : vector<16x32xf32>
    %11 = arith.mulf %10, %10 : vector<16x32xf32>
    %cst_4 = arith.constant dense<0.000000e+00> : vector<16xf32>
    %12 = vector.multi_reduction <add>, %11, %cst_4 [1] : vector<16x32xf32> to vector<16xf32>
    %13 = vector.shape_cast %12 : vector<16xf32> to vector<16x1xf32>
    %cst_5 = arith.constant 3.200000e+01 : f32
    %14 = vector.broadcast %cst_5 : f32 to vector<16x1xf32>
    %15 = arith.divf %13, %14 : vector<16x1xf32>
    %cst_6 = arith.constant 9.99999996E-13 : f32
    %16 = vector.broadcast %cst_6 : f32 to vector<16x1xf32>
    %17 = arith.addf %15, %16 : vector<16x1xf32>
    %18 = math.rsqrt %17 : vector<16x1xf32>
    %19 = vector.broadcast %18 : vector<16x1xf32> to vector<16x32xf32>
    %20 = arith.mulf %10, %19 : vector<16x32xf32>
    %c0_7 = arith.constant 0 : index
    %c0_8 = arith.constant 0 : index
    %21 = vector.load %arg3[%c0_7, %c0_8] : memref<1x32xf32, #tpu.memory_space<vmem>>, vector<1x32xf32>
    %22 = vector.broadcast %21 : vector<1x32xf32> to vector<16x32xf32>
    %23 = arith.mulf %20, %22 : vector<16x32xf32>
    %c0_9 = arith.constant 0 : index
    %c0_10 = arith.constant 0 : index
    %24 = vector.load %arg4[%c0_9, %c0_10] : memref<1x32xf32, #tpu.memory_space<vmem>>, vector<1x32xf32>
    %25 = vector.broadcast %24 : vector<1x32xf32> to vector<16x32xf32>
    %26 = arith.addf %23, %25 : vector<16x32xf32>
    %27 = arith.truncf %26 : vector<16x32xf32> to vector<16x32xbf16>
    %c0_11 = arith.constant 0 : index
    %c0_12 = arith.constant 0 : index
    %28 = vector.load %arg5[%c0_11, %c0_12] : memref<16x32xbf16, #tpu.memory_space<vmem>>, vector<16x32xbf16>
    tpu.vector_store %arg5[%c0_11, %c0_12], %27 {strides = array<i32>} : memref<16x32xbf16, #tpu.memory_space<vmem>>, vector<16x32xbf16>,
    return
  }
  func.func @transform_0(%arg0: i32) -> (i32, i32) {
    %c0_i32 = arith.constant 0 : i32
    %c0_i32_0 = arith.constant 0 : i32
    return %arg0, %c0_i32 : i32, i32
  }
  func.func @transform_1(%arg0: i32) -> (i32, i32) {
    %c0_i32 = arith.constant 0 : i32
    %c0_i32_0 = arith.constant 0 : i32
    return %arg0, %c0_i32 : i32, i32
  }
  func.func @transform_2(%arg0: i32) -> (i32, i32) {
    %c0_i32 = arith.constant 0 : i32
    %c0_i32_0 = arith.constant 0 : i32
    %c0_i32_1 = arith.constant 0 : i32
    return %c0_i32, %c0_i32_0 : i32, i32
  }
  func.func @transform_3(%arg0: i32) -> (i32, i32) {
    %c0_i32 = arith.constant 0 : i32
    %c0_i32_0 = arith.constant 0 : i32
    %c0_i32_1 = arith.constant 0 : i32
    return %c0_i32, %c0_i32_0 : i32, i32
  }
  func.func @transform_4(%arg0: i32) -> (i32, i32) {
    %c0_i32 = arith.constant 0 : i32
    %c0_i32_0 = arith.constant 0 : i32
    return %arg0, %c0_i32 : i32, i32
  }
}

module attributes {stable_mosaic.version = 11 : i64} {
  func.func @_dense_kernel(%arg0: i32, %arg1: i32, %arg2: i32, %arg3: memref<16x64xbf16, #tpu.memory_space<vmem>>, %arg4: memref<64x32xbf16, #tpu.memory_space<vmem>>, %arg5: memref<1x32xf32, #tpu.memory_space<vmem>>, %arg6: memref<16x32xbf16, #tpu.memory_space<vmem>>, %arg7: memref<16x32xf32, #tpu.memory_space<vmem>>) attributes {dimension_semantics = [#tpu.dimension_semantics<parallel>, #tpu.dimension_semantics<parallel>, #tpu.dimension_semantics<arbitrary>], iteration_bounds = array<i64: 1, 1, 1>, scalar_prefetch = 0 : i64, scratch_operands = 1 : i64, tpu.core_type = #tpu.core_type<tc>, window_params = [{transform_indices = @transform_0, window_bounds = array<i64: 16, 64>}, {transform_indices = @transform_1, window_bounds = array<i64: 64, 32>}, {transform_indices = @transform_2, window_bounds = array<i64: 1, 32>}, {transform_indices = @transform_3, window_bounds = array<i64: 16, 32>}]} {
    %c0_i32 = arith.constant 0 : i32
    %0 = arith.cmpi eq, %arg2, %c0_i32 : i32
    %1 = arith.extui %0 : i1 to i32
    %c0_i32_0 = arith.constant 0 : i32
    %2 = arith.cmpi ne, %1, %c0_i32_0 : i32
    scf.if %2 {
      %cst_10 = arith.constant 0.000000e+00 : f32
      %12 = vector.broadcast %cst_10 : f32 to vector<16x32xf32>
      %c0_11 = arith.constant 0 : index
      %c0_12 = arith.constant 0 : index
      %13 = vector.load %arg7[%c0_11, %c0_12] : memref<16x32xf32, #tpu.memory_space<vmem>>, vector<16x32xf32>
      tpu.vector_store %arg7[%c0_11, %c0_12], %12 {strides = array<i32>} : memref<16x32xf32, #tpu.memory_space<vmem>>, vector<16x32xf32>,
    } else {
    }
    %c0 = arith.constant 0 : index
    %c0_1 = arith.constant 0 : index
    %3 = vector.load %arg7[%c0, %c0_1] : memref<16x32xf32, #tpu.memory_space<vmem>>, vector<16x32xf32>
    %c0_2 = arith.constant 0 : index
    %c0_3 = arith.constant 0 : index
    %4 = vector.load %arg3[%c0_2, %c0_3] : memref<16x64xbf16, #tpu.memory_space<vmem>>, vector<16x64xbf16>
    %c0_4 = arith.constant 0 : index
    %c0_5 = arith.constant 0 : index
    %5 = vector.load %arg4[%c0_4, %c0_5] : memref<64x32xbf16, #tpu.memory_space<vmem>>, vector<64x32xbf16>
    %cst = arith.constant dense<0.000000e+00> : vector<16x32xf32>
    %6 = tpu.matmul %4, %5, %cst {dimension_numbers = #tpu.dot_dimension_numbers<[1], [0], [0], [1], [0, 0, 1, 1], [], []>} : vector<16x64xbf16>, vector<64x32xbf16>, vector<16x32xf32> -> vector<16x32xf32>
    %7 = arith.addf %3, %6 : vector<16x32xf32>
    %c0_6 = arith.constant 0 : index
    %c0_7 = arith.constant 0 : index
    %8 = vector.load %arg7[%c0_6, %c0_7] : memref<16x32xf32, #tpu.memory_space<vmem>>, vector<16x32xf32>
    tpu.vector_store %arg7[%c0_6, %c0_7], %7 {strides = array<i32>} : memref<16x32xf32, #tpu.memory_space<vmem>>, vector<16x32xf32>,
    %c0_i32_8 = arith.constant 0 : i32
    %9 = arith.cmpi eq, %arg2, %c0_i32_8 : i32
    %10 = arith.extui %9 : i1 to i32
    %c0_i32_9 = arith.constant 0 : i32
    %11 = arith.cmpi ne, %10, %c0_i32_9 : i32
    scf.if %11 {
      %c0_10 = arith.constant 0 : index
      %c0_11 = arith.constant 0 : index
      %12 = vector.load %arg7[%c0_10, %c0_11] : memref<16x32xf32, #tpu.memory_space<vmem>>, vector<16x32xf32>
      %c0_12 = arith.constant 0 : index
      %c0_13 = arith.constant 0 : index
      %13 = vector.load %arg5[%c0_12, %c0_13] : memref<1x32xf32, #tpu.memory_space<vmem>>, vector<1x32xf32>
      %14 = vector.broadcast %13 : vector<1x32xf32> to vector<16x32xf32>
      %15 = arith.addf %12, %14 : vector<16x32xf32>
      %16 = arith.truncf %15 : vector<16x32xf32> to vector<16x32xbf16>
      %c0_14 = arith.constant 0 : index
      %c0_15 = arith.constant 0 : index
      %17 = vector.load %arg6[%c0_14, %c0_15] : memref<16x32xbf16, #tpu.memory_space<vmem>>, vector<16x32xbf16>
      tpu.vector_store %arg6[%c0_14, %c0_15], %16 {strides = array<i32>} : memref<16x32xbf16, #tpu.memory_space<vmem>>, vector<16x32xbf16>,
    } else {
    }
    return
  }
  func.func @transform_0(%arg0: i32, %arg1: i32, %arg2: i32) -> (i32, i32) {
    %c0_i32 = arith.constant 0 : i32
    return %arg0, %arg2 : i32, i32
  }
  func.func @transform_1(%arg0: i32, %arg1: i32, %arg2: i32) -> (i32, i32) {
    %c0_i32 = arith.constant 0 : i32
    return %arg2, %arg1 : i32, i32
  }
  func.func @transform_2(%arg0: i32, %arg1: i32, %arg2: i32) -> (i32, i32) {
    %c0_i32 = arith.constant 0 : i32
    %c0_i32_0 = arith.constant 0 : i32
    return %c0_i32, %arg1 : i32, i32
  }
  func.func @transform_3(%arg0: i32, %arg1: i32, %arg2: i32) -> (i32, i32) {
    %c0_i32 = arith.constant 0 : i32
    return %arg0, %arg1 : i32, i32
  }
}

module attributes {stable_mosaic.version = 11 : i64} {
  func.func @_dense_kernel(%arg0: i32, %arg1: i32, %arg2: i32, %arg3: memref<2x32xbf16, #tpu.memory_space<vmem>>, %arg4: memref<32x32xbf16, #tpu.memory_space<vmem>>, %arg5: memref<1x32xf32, #tpu.memory_space<vmem>>, %arg6: memref<2x32xf32, #tpu.memory_space<vmem>>, %arg7: memref<2x32xf32, #tpu.memory_space<vmem>>) attributes {dimension_semantics = [#tpu.dimension_semantics<parallel>, #tpu.dimension_semantics<parallel>, #tpu.dimension_semantics<arbitrary>], iteration_bounds = array<i64: 1, 1, 1>, scalar_prefetch = 0 : i64, scratch_operands = 1 : i64, tpu.core_type = #tpu.core_type<tc>, window_params = [{transform_indices = @transform_0, window_bounds = array<i64: 2, 32>}, {transform_indices = @transform_1, window_bounds = array<i64: 32, 32>}, {transform_indices = @transform_2, window_bounds = array<i64: 1, 32>}, {transform_indices = @transform_3, window_bounds = array<i64: 2, 32>}]} {
    %c0_i32 = arith.constant 0 : i32
    %0 = arith.cmpi eq, %arg2, %c0_i32 : i32
    %1 = arith.extui %0 : i1 to i32
    %c0_i32_0 = arith.constant 0 : i32
    %2 = arith.cmpi ne, %1, %c0_i32_0 : i32
    scf.if %2 {
      %cst_10 = arith.constant 0.000000e+00 : f32
      %12 = vector.broadcast %cst_10 : f32 to vector<2x32xf32>
      %c0_11 = arith.constant 0 : index
      %c0_12 = arith.constant 0 : index
      %13 = vector.load %arg7[%c0_11, %c0_12] : memref<2x32xf32, #tpu.memory_space<vmem>>, vector<2x32xf32>
      tpu.vector_store %arg7[%c0_11, %c0_12], %12 {strides = array<i32>} : memref<2x32xf32, #tpu.memory_space<vmem>>, vector<2x32xf32>,
    } else {
    }
    %c0 = arith.constant 0 : index
    %c0_1 = arith.constant 0 : index
    %3 = vector.load %arg7[%c0, %c0_1] : memref<2x32xf32, #tpu.memory_space<vmem>>, vector<2x32xf32>
    %c0_2 = arith.constant 0 : index
    %c0_3 = arith.constant 0 : index
    %4 = vector.load %arg3[%c0_2, %c0_3] : memref<2x32xbf16, #tpu.memory_space<vmem>>, vector<2x32xbf16>
    %c0_4 = arith.constant 0 : index
    %c0_5 = arith.constant 0 : index
    %5 = vector.load %arg4[%c0_4, %c0_5] : memref<32x32xbf16, #tpu.memory_space<vmem>>, vector<32x32xbf16>
    %cst = arith.constant dense<0.000000e+00> : vector<2x32xf32>
    %6 = tpu.matmul %4, %5, %cst {dimension_numbers = #tpu.dot_dimension_numbers<[1], [0], [0], [1], [0, 0, 1, 1], [], []>} : vector<2x32xbf16>, vector<32x32xbf16>, vector<2x32xf32> -> vector<2x32xf32>
    %7 = arith.addf %3, %6 : vector<2x32xf32>
    %c0_6 = arith.constant 0 : index
    %c0_7 = arith.constant 0 : index
    %8 = vector.load %arg7[%c0_6, %c0_7] : memref<2x32xf32, #tpu.memory_space<vmem>>, vector<2x32xf32>
    tpu.vector_store %arg7[%c0_6, %c0_7], %7 {strides = array<i32>} : memref<2x32xf32, #tpu.memory_space<vmem>>, vector<2x32xf32>,
    %c0_i32_8 = arith.constant 0 : i32
    %9 = arith.cmpi eq, %arg2, %c0_i32_8 : i32
    %10 = arith.extui %9 : i1 to i32
    %c0_i32_9 = arith.constant 0 : i32
    %11 = arith.cmpi ne, %10, %c0_i32_9 : i32
    scf.if %11 {
      %c0_10 = arith.constant 0 : index
      %c0_11 = arith.constant 0 : index
      %12 = vector.load %arg7[%c0_10, %c0_11] : memref<2x32xf32, #tpu.memory_space<vmem>>, vector<2x32xf32>
      %c0_12 = arith.constant 0 : index
      %c0_13 = arith.constant 0 : index
      %13 = vector.load %arg5[%c0_12, %c0_13] : memref<1x32xf32, #tpu.memory_space<vmem>>, vector<1x32xf32>
      %14 = vector.broadcast %13 : vector<1x32xf32> to vector<2x32xf32>
      %15 = arith.addf %12, %14 : vector<2x32xf32>
      %16 = math.tanh %15 : vector<2x32xf32>
      %c0_14 = arith.constant 0 : index
      %c0_15 = arith.constant 0 : index
      %17 = vector.load %arg6[%c0_14, %c0_15] : memref<2x32xf32, #tpu.memory_space<vmem>>, vector<2x32xf32>
      tpu.vector_store %arg6[%c0_14, %c0_15], %16 {strides = array<i32>} : memref<2x32xf32, #tpu.memory_space<vmem>>, vector<2x32xf32>,
    } else {
    }
    return
  }
  func.func @transform_0(%arg0: i32, %arg1: i32, %arg2: i32) -> (i32, i32) {
    %c0_i32 = arith.constant 0 : i32
    return %arg0, %arg2 : i32, i32
  }
  func.func @transform_1(%arg0: i32, %arg1: i32, %arg2: i32) -> (i32, i32) {
    %c0_i32 = arith.constant 0 : i32
    return %arg2, %arg1 : i32, i32
  }
  func.func @transform_2(%arg0: i32, %arg1: i32, %arg2: i32) -> (i32, i32) {
    %c0_i32 = arith.constant 0 : i32
    %c0_i32_0 = arith.constant 0 : i32
    return %c0_i32, %arg1 : i32, i32
  }
  func.func @transform_3(%arg0: i32, %arg1: i32, %arg2: i32) -> (i32, i32) {
    %c0_i32 = arith.constant 0 : i32
    return %arg0, %arg1 : i32, i32
  }
}

module attributes {stable_mosaic.version = 11 : i64} {
  func.func @_dense_kernel(%arg0: i32, %arg1: i32, %arg2: i32, %arg3: memref<16x32xbf16, #tpu.memory_space<vmem>>, %arg4: memref<32x64xbf16, #tpu.memory_space<vmem>>, %arg5: memref<1x64xf32, #tpu.memory_space<vmem>>, %arg6: memref<16x64xbf16, #tpu.memory_space<vmem>>, %arg7: memref<16x64xf32, #tpu.memory_space<vmem>>) attributes {dimension_semantics = [#tpu.dimension_semantics<parallel>, #tpu.dimension_semantics<parallel>, #tpu.dimension_semantics<arbitrary>], iteration_bounds = array<i64: 1, 1, 1>, scalar_prefetch = 0 : i64, scratch_operands = 1 : i64, tpu.core_type = #tpu.core_type<tc>, window_params = [{transform_indices = @transform_0, window_bounds = array<i64: 16, 32>}, {transform_indices = @transform_1, window_bounds = array<i64: 32, 64>}, {transform_indices = @transform_2, window_bounds = array<i64: 1, 64>}, {transform_indices = @transform_3, window_bounds = array<i64: 16, 64>}]} {
    %c0_i32 = arith.constant 0 : i32
    %0 = arith.cmpi eq, %arg2, %c0_i32 : i32
    %1 = arith.extui %0 : i1 to i32
    %c0_i32_0 = arith.constant 0 : i32
    %2 = arith.cmpi ne, %1, %c0_i32_0 : i32
    scf.if %2 {
      %cst_10 = arith.constant 0.000000e+00 : f32
      %12 = vector.broadcast %cst_10 : f32 to vector<16x64xf32>
      %c0_11 = arith.constant 0 : index
      %c0_12 = arith.constant 0 : index
      %13 = vector.load %arg7[%c0_11, %c0_12] : memref<16x64xf32, #tpu.memory_space<vmem>>, vector<16x64xf32>
      tpu.vector_store %arg7[%c0_11, %c0_12], %12 {strides = array<i32>} : memref<16x64xf32, #tpu.memory_space<vmem>>, vector<16x64xf32>,
    } else {
    }
    %c0 = arith.constant 0 : index
    %c0_1 = arith.constant 0 : index
    %3 = vector.load %arg7[%c0, %c0_1] : memref<16x64xf32, #tpu.memory_space<vmem>>, vector<16x64xf32>
    %c0_2 = arith.constant 0 : index
    %c0_3 = arith.constant 0 : index
    %4 = vector.load %arg3[%c0_2, %c0_3] : memref<16x32xbf16, #tpu.memory_space<vmem>>, vector<16x32xbf16>
    %c0_4 = arith.constant 0 : index
    %c0_5 = arith.constant 0 : index
    %5 = vector.load %arg4[%c0_4, %c0_5] : memref<32x64xbf16, #tpu.memory_space<vmem>>, vector<32x64xbf16>
    %cst = arith.constant dense<0.000000e+00> : vector<16x64xf32>
    %6 = tpu.matmul %4, %5, %cst {dimension_numbers = #tpu.dot_dimension_numbers<[1], [0], [0], [1], [0, 0, 1, 1], [], []>} : vector<16x32xbf16>, vector<32x64xbf16>, vector<16x64xf32> -> vector<16x64xf32>
    %7 = arith.addf %3, %6 : vector<16x64xf32>
    %c0_6 = arith.constant 0 : index
    %c0_7 = arith.constant 0 : index
    %8 = vector.load %arg7[%c0_6, %c0_7] : memref<16x64xf32, #tpu.memory_space<vmem>>, vector<16x64xf32>
    tpu.vector_store %arg7[%c0_6, %c0_7], %7 {strides = array<i32>} : memref<16x64xf32, #tpu.memory_space<vmem>>, vector<16x64xf32>,
    %c0_i32_8 = arith.constant 0 : i32
    %9 = arith.cmpi eq, %arg2, %c0_i32_8 : i32
    %10 = arith.extui %9 : i1 to i32
    %c0_i32_9 = arith.constant 0 : i32
    %11 = arith.cmpi ne, %10, %c0_i32_9 : i32
    scf.if %11 {
      %c0_10 = arith.constant 0 : index
      %c0_11 = arith.constant 0 : index
      %12 = vector.load %arg7[%c0_10, %c0_11] : memref<16x64xf32, #tpu.memory_space<vmem>>, vector<16x64xf32>
      %c0_12 = arith.constant 0 : index
      %c0_13 = arith.constant 0 : index
      %13 = vector.load %arg5[%c0_12, %c0_13] : memref<1x64xf32, #tpu.memory_space<vmem>>, vector<1x64xf32>
      %14 = vector.broadcast %13 : vector<1x64xf32> to vector<16x64xf32>
      %15 = arith.addf %12, %14 : vector<16x64xf32>
      %cst_14 = arith.constant 5.000000e-01 : f32
      %16 = vector.broadcast %cst_14 : f32 to vector<16x64xf32>
      %17 = arith.mulf %16, %15 : vector<16x64xf32>
      %cst_15 = arith.constant 4.471500e-02 : f32
      %18 = vector.broadcast %cst_15 : f32 to vector<16x64xf32>
      %19 = arith.mulf %18, %15 : vector<16x64xf32>
      %20 = arith.mulf %19, %15 : vector<16x64xf32>
      %21 = arith.mulf %20, %15 : vector<16x64xf32>
      %22 = arith.addf %15, %21 : vector<16x64xf32>
      %cst_16 = arith.constant 0.797884583 : f32
      %23 = vector.broadcast %cst_16 : f32 to vector<16x64xf32>
      %24 = arith.mulf %23, %22 : vector<16x64xf32>
      %25 = math.tanh %24 : vector<16x64xf32>
      %cst_17 = arith.constant 1.000000e+00 : f32
      %26 = vector.broadcast %cst_17 : f32 to vector<16x64xf32>
      %27 = arith.addf %26, %25 : vector<16x64xf32>
      %28 = arith.mulf %17, %27 : vector<16x64xf32>
      %29 = arith.truncf %28 : vector<16x64xf32> to vector<16x64xbf16>
      %c0_18 = arith.constant 0 : index
      %c0_19 = arith.constant 0 : index
      %30 = vector.load %arg6[%c0_18, %c0_19] : memref<16x64xbf16, #tpu.memory_space<vmem>>, vector<16x64xbf16>
      tpu.vector_store %arg6[%c0_18, %c0_19], %29 {strides = array<i32>} : memref<16x64xbf16, #tpu.memory_space<vmem>>, vector<16x64xbf16>,
    } else {
    }
    return
  }
  func.func @transform_0(%arg0: i32, %arg1: i32, %arg2: i32) -> (i32, i32) {
    %c0_i32 = arith.constant 0 : i32
    return %arg0, %arg2 : i32, i32
  }
  func.func @transform_1(%arg0: i32, %arg1: i32, %arg2: i32) -> (i32, i32) {
    %c0_i32 = arith.constant 0 : i32
    return %arg2, %arg1 : i32, i32
  }
  func.func @transform_2(%arg0: i32, %arg1: i32, %arg2: i32) -> (i32, i32) {
    %c0_i32 = arith.constant 0 : i32
    %c0_i32_0 = arith.constant 0 : i32
    return %c0_i32, %arg1 : i32, i32
  }
  func.func @transform_3(%arg0: i32, %arg1: i32, %arg2: i32) -> (i32, i32) {
    %c0_i32 = arith.constant 0 : i32
    return %arg0, %arg1 : i32, i32
  }
}

module attributes {stable_mosaic.version = 11 : i64} {
  func.func @_dense_kernel(%arg0: i32, %arg1: i32, %arg2: i32, %arg3: memref<2x32xbf16, #tpu.memory_space<vmem>>, %arg4: memref<32x128xbf16, #tpu.memory_space<vmem>>, %arg5: memref<1x128xf32, #tpu.memory_space<vmem>>, %arg6: memref<2x128xf32, #tpu.memory_space<vmem>>, %arg7: memref<2x128xf32, #tpu.memory_space<vmem>>) attributes {dimension_semantics = [#tpu.dimension_semantics<parallel>, #tpu.dimension_semantics<parallel>, #tpu.dimension_semantics<arbitrary>], iteration_bounds = array<i64: 1, 1, 1>, scalar_prefetch = 0 : i64, scratch_operands = 1 : i64, tpu.core_type = #tpu.core_type<tc>, window_params = [{transform_indices = @transform_0, window_bounds = array<i64: 2, 32>}, {transform_indices = @transform_1, window_bounds = array<i64: 32, 128>}, {transform_indices = @transform_2, window_bounds = array<i64: 1, 128>}, {transform_indices = @transform_3, window_bounds = array<i64: 2, 128>}]} {
    %c0_i32 = arith.constant 0 : i32
    %0 = arith.cmpi eq, %arg2, %c0_i32 : i32
    %1 = arith.extui %0 : i1 to i32
    %c0_i32_0 = arith.constant 0 : i32
    %2 = arith.cmpi ne, %1, %c0_i32_0 : i32
    scf.if %2 {
      %cst_10 = arith.constant 0.000000e+00 : f32
      %12 = vector.broadcast %cst_10 : f32 to vector<2x128xf32>
      %c0_11 = arith.constant 0 : index
      %c0_12 = arith.constant 0 : index
      %13 = vector.load %arg7[%c0_11, %c0_12] : memref<2x128xf32, #tpu.memory_space<vmem>>, vector<2x128xf32>
      tpu.vector_store %arg7[%c0_11, %c0_12], %12 {strides = array<i32>} : memref<2x128xf32, #tpu.memory_space<vmem>>, vector<2x128xf32>,
    } else {
    }
    %c0 = arith.constant 0 : index
    %c0_1 = arith.constant 0 : index
    %3 = vector.load %arg7[%c0, %c0_1] : memref<2x128xf32, #tpu.memory_space<vmem>>, vector<2x128xf32>
    %c0_2 = arith.constant 0 : index
    %c0_3 = arith.constant 0 : index
    %4 = vector.load %arg3[%c0_2, %c0_3] : memref<2x32xbf16, #tpu.memory_space<vmem>>, vector<2x32xbf16>
    %c0_4 = arith.constant 0 : index
    %c0_5 = arith.constant 0 : index
    %5 = vector.load %arg4[%c0_4, %c0_5] : memref<32x128xbf16, #tpu.memory_space<vmem>>, vector<32x128xbf16>
    %cst = arith.constant dense<0.000000e+00> : vector<2x128xf32>
    %6 = tpu.matmul %4, %5, %cst {dimension_numbers = #tpu.dot_dimension_numbers<[1], [0], [0], [1], [0, 0, 1, 1], [], []>} : vector<2x32xbf16>, vector<32x128xbf16>, vector<2x128xf32> -> vector<2x128xf32>
    %7 = arith.addf %3, %6 : vector<2x128xf32>
    %c0_6 = arith.constant 0 : index
    %c0_7 = arith.constant 0 : index
    %8 = vector.load %arg7[%c0_6, %c0_7] : memref<2x128xf32, #tpu.memory_space<vmem>>, vector<2x128xf32>
    tpu.vector_store %arg7[%c0_6, %c0_7], %7 {strides = array<i32>} : memref<2x128xf32, #tpu.memory_space<vmem>>, vector<2x128xf32>,
    %c0_i32_8 = arith.constant 0 : i32
    %9 = arith.cmpi eq, %arg2, %c0_i32_8 : i32
    %10 = arith.extui %9 : i1 to i32
    %c0_i32_9 = arith.constant 0 : i32
    %11 = arith.cmpi ne, %10, %c0_i32_9 : i32
    scf.if %11 {
      %c0_10 = arith.constant 0 : index
      %c0_11 = arith.constant 0 : index
      %12 = vector.load %arg7[%c0_10, %c0_11] : memref<2x128xf32, #tpu.memory_space<vmem>>, vector<2x128xf32>
      %c0_12 = arith.constant 0 : index
      %c0_13 = arith.constant 0 : index
      %13 = vector.load %arg5[%c0_12, %c0_13] : memref<1x128xf32, #tpu.memory_space<vmem>>, vector<1x128xf32>
      %14 = vector.broadcast %13 : vector<1x128xf32> to vector<2x128xf32>
      %15 = arith.addf %12, %14 : vector<2x128xf32>
      %c0_14 = arith.constant 0 : index
      %c0_15 = arith.constant 0 : index
      %16 = vector.load %arg6[%c0_14, %c0_15] : memref<2x128xf32, #tpu.memory_space<vmem>>, vector<2x128xf32>
      tpu.vector_store %arg6[%c0_14, %c0_15], %15 {strides = array<i32>} : memref<2x128xf32, #tpu.memory_space<vmem>>, vector<2x128xf32>,
    } else {
    }
    return
  }
  func.func @transform_0(%arg0: i32, %arg1: i32, %arg2: i32) -> (i32, i32) {
    %c0_i32 = arith.constant 0 : i32
    return %arg0, %arg2 : i32, i32
  }
  func.func @transform_1(%arg0: i32, %arg1: i32, %arg2: i32) -> (i32, i32) {
    %c0_i32 = arith.constant 0 : i32
    return %arg2, %arg1 : i32, i32
  }
  func.func @transform_2(%arg0: i32, %arg1: i32, %arg2: i32) -> (i32, i32) {
    %c0_i32 = arith.constant 0 : i32
    %c0_i32_0 = arith.constant 0 : i32
    return %c0_i32, %arg1 : i32, i32
  }
  func.func @transform_3(%arg0: i32, %arg1: i32, %arg2: i32) -> (i32, i32) {
    %c0_i32 = arith.constant 0 : i32
    return %arg0, %arg1 : i32, i32
  }
}

</mosaic_0001>

<bundles_post_ra>
// kernel: bert_stance_forward.18
= control target key start
LH: loop header
LB: loop body
LE: loop exit
PB: predicated region body
PF: predicated region fallthrough
CT: control target
= control target key end

     0   :  { %vm19_vm0 = vcmask 785408   ;;  %v108_v1 = vmov 0.0   ;;  %vm47_vm1 = vcmask 261120   ;;  %vm83_vm2 = vcmask 781312   ;;  %s151_s1 = inlined_call_operand.vmem [shape: bf16[32,96], index: 1, kind: input, shape index: {}]   ;;  %s152_s2 = inlined_call_operand.vmem [shape: f32[1,96], index: 2, kind: input, shape index: {}]   ;;  %s153_s0 = inlined_call_operand.vmem [shape: bf16[16,32], index: 0, kind: input, shape index: {}]   ;;  %s154_s3 = inlined_call_operand.vmem [shape: bf16[16,96], index: 3, kind: output, shape index: {}]  }
   0x1   :  { %v105_v0 = vld [vmem:[%s151_s1 + $0x8] sm:$0xff]  ;;  %20 = vst.msk [vmem:[#allocation2] sm:$0xff] %vm19_vm0, %v108_v1  ;;  %v104_v2 = vld [vmem:[%s151_s1] sm:$0xff] }
   0x2   :  { %21 = vst.msk [vmem:[#allocation2 + $0x8] sm:$0xff] %vm19_vm0, %v108_v1  ;;  %57 = vmatpush.bf16.msra.mxu0 %v105_v0  ;;  %v103_v3 = vld [vmem:[%s153_s0] sm:$0xff] }
   0x3   :  { %v107_v8 = vld [vmem:[%s152_s2] ss:$0 sm:$0xff] }
   0x6   :  { %58 = vmatpush.bf16.msra.mxu0 %v104_v2 }
   0x8   :  { %v22_v4 = vld [vmem:[#allocation2] sm:$0xff] }
   0x9   :  { %102 = vmatmul.msk.bf16.vlgmr.msra.gmra.mxu0 %vm47_vm1, %v103_v3  ;;  %v23_v7 = vld [vmem:[#allocation2 + $0x8] sm:$0xff] }
  0x86   :  { %v60_v5 = vpop.f32.mrf.mxu0 }
  0x87   :  { %v65_v6 = vadd.f32 %v60_v5, %v22_v4 }
  0x89   :  { %68 = vst.msk [vmem:[#allocation2] sm:$0xff] %vm19_vm0, %v65_v6 }
  0x8e   :  { %v62_v9 = vpop.f32.mrf.mxu0 }
  0x8f   :  { %v66_v10 = vadd.f32 %v62_v9, %v23_v7 }
  0x90   :  { %v73_v11 = vld [vmem:[#allocation2] sm:$0xff] }
  0x91   :  { %v79_v12 = vadd.f32 %v107_v8, %v73_v11  ;;  %69 = vst.msk [vmem:[#allocation2 + $0x8] sm:$0xff] %vm19_vm0, %v66_v10 }
  0x93   :  { %v81_v13 = vpack.c.bf16 %v79_v12, %v79_v12 }
  0x95   :  { %84 = vst.msk [vmem:[%s154_s3] sm:$0xf] %vm83_vm2, %v81_v13 }
  0x98   :  { %v74_v14 = vld [vmem:[#allocation2 + $0x8] sm:$0xff] }
  0x99   :  { %v80_v15 = vadd.f32 %v107_v8, %v74_v14 }
  0x9b   :  { %v82_v16 = vpack.c.bf16 %v80_v15, %v80_v15 }
  0x9d   :  { %85 = vst.msk [vmem:[%s154_s3 + $0x4] sm:$0xf] %vm83_vm2, %v82_v16 }

// kernel: bert_stance_forward.19
= control target key start
LH: loop header
LB: loop body
LE: loop exit
PB: predicated region body
PF: predicated region fallthrough
CT: control target
= control target key end

     0   :  { %s689_s15 = smov 0   ;;  %s691_s16 = smov 0   ;;  %s747_s0 = inlined_call_operand.vmem [shape: bf16[2,2,8,16], index: 0, kind: input, shape index: {}]   ;;  %s748_s1 = inlined_call_operand.vmem [shape: bf16[2,2,8,16], index: 1, kind: input, shape index: {}]   ;;  %s749_s2 = inlined_call_operand.vmem [shape: bf16[2,2,8,16], index: 2, kind: input, shape index: {}]   ;;  %s750_s3 = inlined_call_operand.vmem [shape: f32[2,1,8], index: 3, kind: input, shape index: {}]   ;;  %s751_s4 = inlined_call_operand.vmem [shape: bf16[2,2,8,16], index: 4, kind: output, shape index: {}]  }
   0x1   :  { %s693_s17 = smov 0  }
   0x2 LB: > { %s26_s18 = sadd.s32 1, %s658_s16  ;;  %p584_p0 = scmp.ge.s32.totalorder %s662_s17, 1  ;;  %s662_s17 = sphi %s693_s17, %s14_s17   ;;  %s658_s16 = sphi %s691_s16, %s753_s16   ;;  %s654_s15 = sphi %s689_s15, %s752_s15  }
   0x3   : > { %p28_p1 = scmp.ge.s32.totalorder %s26_s18, 2  ;;  %p225_p2 = scmp.lt.s32.totalorder %s662_s17, 3 }
   0x5   : > { %s755_s18 = smov (%p28_p1, %s26_s18), 0  ;;  %p226_p3 = pnand %p584_p0, %p225_p2 }
   0x6   : > { %p281_p4 = scmp.lt.s32.totalorder (!%p226_p3), %s654_s15, 1 }
   0x7   : > { %229 = sbr.rel (%p226_p3) target bundleno = 430 (0x1ae), region = 36 }
   0xc   : > { %s757_s15 = smov (!%p281_p4, %s654_s15), 1  ;;  %vm340_vm0 = vcmask 130048   ;;  %vm379_vm1 = vcmask 64512   ;;  %vm403_vm2 = vcmask 1043456   ;;  %vm445_vm3 = vcmask 125952  }
   0xd   : > { %s707_s19 = sshll.u32 %s757_s15, 3  ;;  %s312_s22 = scalar_lea.vmem %s750_s3, %s757_s15 }
   0xe   : > { %s298_s25 = scalar_lea.vmem %s748_s1, %s707_s19  ;;  %s288_s28 = scalar_lea.vmem %s747_s0, %s707_s19  ;;  %v631_v11 = vld [vmem:[%s312_s22] ss:$0 sm:$0xff] }
   0xf   : > { %v332_v0 = vld [vmem:[%s298_s25] sm:$0xf]  ;;  %v333_v1 = vld [vmem:[%s298_s25 + $0x4] sm:$0xf]  ;;  %s308_s5 = scalar_lea.vmem %s749_s2, %s707_s19  ;;  %s321_s8 = scalar_lea.vmem %s751_s4, %s707_s19 }
  0x10   : > { %v604_v2 = vld [vmem:[%s288_s28] sm:$0xff]   ;;  %v345_v3 = vsel %vm340_vm0, %v332_v0, 0  ;;  %v364_v4 = vsel %vm340_vm0, %v333_v1, 0 }
  0x11   : > { %v605_v5 = vunpack.c.l.bf16 %v604_v2  ;;  %v606_v6 = vunpack.c.h.bf16 %v604_v2  ;;  %354 = vmatpush.bf16.xpose.msra.mxu0 %v345_v3  ;;  %373 = vmatpush.bf16.xpose.msra.mxu1 %v364_v4  ;;  %v334_v20 = vld [vmem:[%s308_s5] sm:$0xf]  ;;  %v335_v22 = vld [vmem:[%s308_s5 + $0x4] sm:$0xf] }
  0x12   : > { %v405_v21 = vsel %vm403_vm2, %v334_v20, 0  ;;  %v424_v23 = vsel %vm403_vm2, %v335_v22, 0 }
  0x13   : > { %v328_v7 = vmul.f32 0.25, %v605_v5  ;;  %v329_v8 = vmul.f32 0.25, %v606_v6  ;;  %414 = vmatpush.bf16.msra.mxu2 %v405_v21  ;;  %433 = vmatpush.bf16.msra.mxu3 %v424_v23 }
  0x15   : > { %v330_v9 = vpack.c.bf16 %v328_v7, %v328_v7  ;;  %v331_v10 = vpack.c.bf16 %v329_v8, %v329_v8 }
  0x18   : > { %593 = vmatmul.msk.bf16.vlgmr.msra.gmra.mxu0 %vm340_vm0, %v330_v9  ;;  %594 = vmatmul.msk.bf16.vlgmr.msra.gmra.mxu1 %vm340_vm0, %v331_v10 }
  0x95   : > { %v356_v12 = vpop.f32.mrf.mxu0  ;;  %v375_v13 = vpop.f32.mrf.mxu1 }
  0x96   : > { %v357_v14 = vadd.f32 %v631_v11, %v356_v12  ;;  %v376_v16 = vadd.f32 %v631_v11, %v375_v13 }
  0x98   : > { %v380_v15 = vsel %vm379_vm1, %v357_v14, -inf  ;;  %v383_v19 = vsel %vm379_vm1, %v376_v16, -inf }
  0x99   : > { %381 = vmax.xlane.f32.xlu0 %v380_v15 }
  0x9d   : > { %v358_v17 = vpop.f32.mrf.mxu0  ;;  %v377_v18 = vpop.f32.mrf.mxu1 }
  0xa1   : > { %384 = vmax.xlane.f32.xlu0 %v383_v19 }
 0x10c   : > { %v382_v24 = vpop.xlane.xlu0 %381 }
 0x10d   : > { %v386_v25 = vsub.f32 %v357_v14, %v382_v24 }
 0x10f   : > { %v388_v26 = vmul.f32 1.442695, %v386_v25 }
 0x111   : > { %632 = vpow2.f32 %v388_v26 }
 0x114   : > { %v385_v27 = vpop.xlane.xlu0 %384 }
 0x115   : > { %v387_v28 = vsub.f32 %v376_v16, %v385_v27 }
 0x117   : > { %v633_v29 = vpop.eup %632  ;;  %v390_v30 = vmul.f32 1.442695, %v387_v28 }
 0x118   : > { %v392_v31 = vsel %vm379_vm1, %v633_v29, 0.0  ;;  %v398_v32 = vpack.c.bf16 %v633_v29, %v633_v29 }
 0x119   : > { %634 = vpow2.f32 %v390_v30  ;;  %393 = vadd.xlane.f32.xlu1 %v392_v31 }
 0x11a   : > { %595 = vmatmul.msk.bf16.vlgmr.msra.gmra.mxu2 %vm379_vm1, %v398_v32 }
 0x11f   : > { %v635_v33 = vpop.eup %634 }
 0x120   : > { %v395_v34 = vsel %vm379_vm1, %v635_v33, 0.0  ;;  %v399_v35 = vpack.c.bf16 %v635_v33, %v635_v33 }
 0x121   : > { %396 = vadd.xlane.f32.xlu1 %v395_v34 }
 0x122   : > { %596 = vmatmul.msk.bf16.vlgmr.msra.gmra.mxu3 %vm379_vm1, %v399_v35 }
 0x18c   : > { %v394_v36 = vpop.xlane.xlu1 %393 }
 0x18d   : > { %636 = vrcp.f32 %v394_v36 }
 0x193   : > { %v637_v38 = vpop.eup %636 }
 0x194   : > { %v397_v37 = vpop.xlane.xlu1 %396 }
 0x195   : > { %638 = vrcp.f32 %v397_v37 }
 0x19b   : > { %v639_v42 = vpop.eup %638 }
 0x19d   : > { %v416_v39 = vpop.f32.mrf.mxu2 }
 0x19e   : > { %v441_v40 = vmul.f32 %v637_v38, %v416_v39 }
 0x1a0   : > { %v443_v41 = vpack.c.bf16 %v441_v40, %v441_v40 }
 0x1a2   : > { %446 = vst.msk [vmem:[%s321_s8] sm:$0xf] %vm445_vm3, %v443_v41 }
 0x1a5   : > { %v418_v43 = vpop.f32.mrf.mxu2  ;;  %v435_v44 = vpop.f32.mrf.mxu3 }
 0x1a6   : > { %v442_v45 = vmul.f32 %v639_v42, %v435_v44 }
 0x1a8   : > { %v444_v46 = vpack.c.bf16 %v442_v45, %v442_v45 }
 0x1aa   : > { %447 = vst.msk [vmem:[%s321_s8 + $0x4] sm:$0xf] %vm445_vm3, %v444_v46 }
 0x1ad   : > { %v437_v47 = vpop.f32.mrf.mxu3 }
 0x1ae PF: > { %s14_s17 = sadd.s32 1, %s662_s17   ;;  %s752_s15 = smov %s658_s16 }
 0x1af   : > { %p11_p5 = scmp.ge.s32.totalorder %s14_s17, 4   ;;  %s753_s16 = smov %s755_s18 }
 0x1b1   :  { %13 = sbr.rel (!%p11_p5) target bundleno = 2 (0x2), region = 75 }

// kernel: bert_stance_forward.17
= control target key start
LH: loop header
LB: loop body
LE: loop exit
PB: predicated region body
PF: predicated region fallthrough
CT: control target
= control target key end

     0   :  { %vm16_vm0 = vcmask 261120   ;;  %v98_v4 = vmov 32.0   ;;  %vm82_vm6 = vcmask 257024   ;;  %s141_s0 = inlined_call_operand.vmem [shape: f32[16,32], index: 0, kind: input, shape index: {}]   ;;  %s142_s1 = inlined_call_operand.vmem [shape: f32[1,32], index: 1, kind: input, shape index: {}]   ;;  %s143_s2 = inlined_call_operand.vmem [shape: f32[1,32], index: 2, kind: input, shape index: {}]   ;;  %s144_s3 = inlined_call_operand.vmem [shape: bf16[16,32], index: 3, kind: output, shape index: {}]  }
   0x1   :  { %v14_v0 = vld [vmem:[%s141_s0] sm:$0xff]  ;;  %v15_v2 = vld [vmem:[%s141_s0 + $0x8] sm:$0xff]  ;;  %92 = vrcp.f32 %v98_v4 }
   0x2   :  { %v17_v1 = vsel %vm16_vm0, %v14_v0, 0.0  ;;  %v20_v3 = vsel %vm16_vm0, %v15_v2, 0.0  ;;  %v90_v35 = vld [vmem:[%s142_s1] ss:$0 sm:$0xff] }
   0x3   :  { %18 = vadd.xlane.f32.xlu0 %v17_v1  ;;  %v91_v38 = vld [vmem:[%s143_s2] ss:$0 sm:$0xff] }
   0x7   :  { %v93_v5 = vpop.eup %92 }
   0x8   :  { %v24_v6 = vmul.f32 32.0, %v93_v5  ;;  %vm28_vm1 = vweird.f32 %v93_v5 }
   0xa   :  { %v25_v7 = vsub.f32 1.0, %v24_v6 }
   0xb   :  { %21 = vadd.xlane.f32.xlu0 %v20_v3 }
   0xc   :  { %v26_v8 = vmul.f32 %v93_v5, %v25_v7 }
   0xe   :  { %v27_v9 = vadd.f32 %v93_v5, %v26_v8 }
  0x10   :  { %v29_v10 = vsel %vm28_vm1, %v93_v5, %v27_v9 }
  0x76   :  { %v19_v11 = vpop.xlane.xlu0 %18 }
  0x77   :  { %v30_v12 = vmul.f32 %v29_v10, %v19_v11 }
  0x79   :  { %v32_v13 = vsub.f32 %v14_v0, %v30_v12 }
  0x7b   :  { %v34_v14 = vmul.f32 %v32_v13, %v32_v13 }
  0x7d   :  { %v36_v15 = vsel %vm16_vm0, %v34_v14, 0.0 }
  0x7e   :  { %37 = vadd.xlane.f32.xlu1 %v36_v15  ;;  %v22_v16 = vpop.xlane.xlu0 %21 }
  0x7f   :  { %v31_v17 = vmul.f32 %v29_v10, %v22_v16 }
  0x81   :  { %v33_v18 = vsub.f32 %v15_v2, %v31_v17 }
  0x83   :  { %v35_v19 = vmul.f32 %v33_v18, %v33_v18 }
  0x85   :  { %v39_v20 = vsel %vm16_vm0, %v35_v19, 0.0 }
  0x86   :  { %40 = vadd.xlane.f32.xlu1 %v39_v20 }
  0xf1   :  { %v38_v21 = vpop.xlane.xlu1 %37 }
  0xf2   :  { %v42_v22 = vmul.f32 %v38_v21, %v29_v10 }
  0xf4   :  { %v44_v23 = vadd.f32 1e-12, %v42_v22 }
  0xf6   :  { %94 = vrsqrt.f32 %v44_v23  ;;  %vm52_vm3 = vweird.f32 %v44_v23 }
  0xf9   :  { %v41_v24 = vpop.xlane.xlu1 %40 }
  0xfa   :  { %v43_v25 = vmul.f32 %v41_v24, %v29_v10 }
  0xfc   :  { %v95_v26 = vpop.eup %94  ;;  %v45_v27 = vadd.f32 1e-12, %v43_v25 }
  0xfd   :  { %v47_v28 = vmul.f32 %v95_v26, %v44_v23  ;;  %vm53_vm2 = vweird.f32 %v95_v26 }
  0xfe   :  { %96 = vrsqrt.f32 %v45_v27  ;;  %vm54_vm4 = vmor %vm52_vm3, %vm53_vm2  ;;  %vm62_vm7 = vweird.f32 %v45_v27 }
  0xff   :  { %v48_v29 = vmul.f32 %v95_v26, %v47_v28 }
 0x101   :  { %v49_v30 = vmul.f32 0.5, %v48_v29 }
 0x103   :  { %v50_v31 = vsub.f32 1.5, %v49_v30 }
 0x104   :  { %v97_v32 = vpop.eup %96 }
 0x105   :  { %v51_v33 = vmul.f32 %v95_v26, %v50_v31  ;;  %v57_v34 = vmul.f32 %v97_v32, %v45_v27  ;;  %vm63_vm5 = vweird.f32 %v97_v32 }
 0x106   :  { %vm64_vm8 = vmor %vm62_vm7, %vm63_vm5 }
 0x107   :  { %v55_v36 = vsel %vm54_vm4, %v95_v26, %v51_v33  ;;  %v58_v37 = vmul.f32 %v97_v32, %v57_v34 }
 0x108   :  { %v66_v39 = vmul.f32 %v55_v36, %v32_v13 }
 0x109   :  { %v59_v40 = vmul.f32 0.5, %v58_v37 }
 0x10a   :  { %v72_v41 = vmul.f32 %v90_v35, %v66_v39 }
 0x10b   :  { %v60_v42 = vsub.f32 1.5, %v59_v40 }
 0x10c   :  { %v78_v43 = vadd.f32 %v91_v38, %v72_v41 }
 0x10d   :  { %v61_v44 = vmul.f32 %v97_v32, %v60_v42 }
 0x10e   :  { %v80_v45 = vpack.c.bf16 %v78_v43, %v78_v43 }
 0x10f   :  { %v65_v46 = vsel %vm64_vm8, %v97_v32, %v61_v44 }
 0x110   :  { %83 = vst.msk [vmem:[%s144_s3] sm:$0xf] %vm82_vm6, %v80_v45  ;;  %v67_v47 = vmul.f32 %v65_v46, %v33_v18 }
 0x112   :  { %v73_v48 = vmul.f32 %v90_v35, %v67_v47 }
 0x114   :  { %v79_v49 = vadd.f32 %v91_v38, %v73_v48 }
 0x116   :  { %v81_v50 = vpack.c.bf16 %v79_v49, %v79_v49 }
 0x118   :  { %84 = vst.msk [vmem:[%s144_s3 + $0x4] sm:$0xf] %vm82_vm6, %v81_v50 }

// kernel: bert_stance_forward.20
= control target key start
LH: loop header
LB: loop body
LE: loop exit
PB: predicated region body
PF: predicated region fallthrough
CT: control target
= control target key end

     0   :  { %vm19_vm0 = vcmask 261120   ;;  %v107_v1 = vmov 0.0   ;;  %vm82_vm1 = vcmask 257024   ;;  %s151_s1 = inlined_call_operand.vmem [shape: bf16[32,32], index: 1, kind: input, shape index: {}]   ;;  %s152_s2 = inlined_call_operand.vmem [shape: f32[1,32], index: 2, kind: input, shape index: {}]   ;;  %s153_s0 = inlined_call_operand.vmem [shape: bf16[16,32], index: 0, kind: input, shape index: {}]   ;;  %s154_s3 = inlined_call_operand.vmem [shape: bf16[16,32], index: 3, kind: output, shape index: {}]  }
   0x1   :  { %v104_v0 = vld [vmem:[%s151_s1 + $0x8] sm:$0xff]  ;;  %20 = vst.msk [vmem:[#allocation2] sm:$0xff] %vm19_vm0, %v107_v1  ;;  %v103_v2 = vld [vmem:[%s151_s1] sm:$0xff] }
   0x2   :  { %21 = vst.msk [vmem:[#allocation2 + $0x8] sm:$0xff] %vm19_vm0, %v107_v1  ;;  %57 = vmatpush.bf16.msra.mxu0 %v104_v0  ;;  %v102_v3 = vld [vmem:[%s153_s0] sm:$0xff] }
   0x3   :  { %v106_v8 = vld [vmem:[%s152_s2] ss:$0 sm:$0xff] }
   0x6   :  { %58 = vmatpush.bf16.msra.mxu0 %v103_v2 }
   0x8   :  { %v22_v4 = vld [vmem:[#allocation2] sm:$0xff] }
   0x9   :  { %101 = vmatmul.msk.bf16.vlgmr.msra.gmra.mxu0 %vm19_vm0, %v102_v3  ;;  %v23_v7 = vld [vmem:[#allocation2 + $0x8] sm:$0xff] }
  0x86   :  { %v60_v5 = vpop.f32.mrf.mxu0 }
  0x87   :  { %v65_v6 = vadd.f32 %v60_v5, %v22_v4 }
  0x89   :  { %67 = vst.msk [vmem:[#allocation2] sm:$0xff] %vm19_vm0, %v65_v6 }
  0x8e   :  { %v62_v9 = vpop.f32.mrf.mxu0 }
  0x8f   :  { %v66_v10 = vadd.f32 %v62_v9, %v23_v7 }
  0x90   :  { %v72_v11 = vld [vmem:[#allocation2] sm:$0xff] }
  0x91   :  { %v78_v12 = vadd.f32 %v106_v8, %v72_v11  ;;  %68 = vst.msk [vmem:[#allocation2 + $0x8] sm:$0xff] %vm19_vm0, %v66_v10 }
  0x93   :  { %v80_v13 = vpack.c.bf16 %v78_v12, %v78_v12 }
  0x95   :  { %83 = vst.msk [vmem:[%s154_s3] sm:$0xf] %vm82_vm1, %v80_v13 }
  0x98   :  { %v73_v14 = vld [vmem:[#allocation2 + $0x8] sm:$0xff] }
  0x99   :  { %v79_v15 = vadd.f32 %v106_v8, %v73_v14 }
  0x9b   :  { %v81_v16 = vpack.c.bf16 %v79_v15, %v79_v15 }
  0x9d   :  { %84 = vst.msk [vmem:[%s154_s3 + $0x4] sm:$0xf] %vm82_vm1, %v81_v16 }

// kernel: bert_stance_forward.21
= control target key start
LH: loop header
LB: loop body
LE: loop exit
PB: predicated region body
PF: predicated region fallthrough
CT: control target
= control target key end

     0   :  { %vm27_vm0 = vcmask 261120   ;;  %v117_v10 = vmov 32.0   ;;  %vm93_vm6 = vcmask 257024   ;;  %s165_s0 = inlined_call_operand.vmem [shape: bf16[16,32], index: 0, kind: input, shape index: {}]   ;;  %s166_s1 = inlined_call_operand.vmem [shape: bf16[16,32], index: 1, kind: input, shape index: {}]   ;;  %s167_s2 = inlined_call_operand.vmem [shape: f32[1,32], index: 2, kind: input, shape index: {}]   ;;  %s168_s3 = inlined_call_operand.vmem [shape: f32[1,32], index: 3, kind: input, shape index: {}]   ;;  %s169_s4 = inlined_call_operand.vmem [shape: bf16[16,32], index: 4, kind: output, shape index: {}]  }
   0x1   :  { %v101_v0 = vld [vmem:[%s165_s0] sm:$0xff]   ;;  %111 = vrcp.f32 %v117_v10 }
   0x2   :  { %v105_v1 = vld [vmem:[%s166_s1] sm:$0xff]   ;;  %v102_v2 = vunpack.c.l.bf16 %v101_v0  ;;  %v103_v5 = vunpack.c.h.bf16 %v101_v0 }
   0x3   :  { %v106_v3 = vunpack.c.l.bf16 %v105_v1  ;;  %v107_v6 = vunpack.c.h.bf16 %v105_v1  ;;  %v109_v41 = vld [vmem:[%s167_s2] ss:$0 sm:$0xff] }
   0x4   :  { %v110_v44 = vld [vmem:[%s168_s3] ss:$0 sm:$0xff] }
   0x5   :  { %v25_v4 = vadd.f32 %v106_v3, %v102_v2  ;;  %v26_v8 = vadd.f32 %v107_v6, %v103_v5 }
   0x7   :  { %v28_v7 = vsel %vm27_vm0, %v25_v4, 0.0  ;;  %v31_v9 = vsel %vm27_vm0, %v26_v8, 0.0  ;;  %v112_v11 = vpop.eup %111 }
   0x8   :  { %29 = vadd.xlane.f32.xlu0 %v28_v7  ;;  %v35_v12 = vmul.f32 32.0, %v112_v11  ;;  %vm39_vm1 = vweird.f32 %v112_v11 }
   0xa   :  { %v36_v13 = vsub.f32 1.0, %v35_v12 }
   0xc   :  { %v37_v14 = vmul.f32 %v112_v11, %v36_v13 }
   0xe   :  { %v38_v15 = vadd.f32 %v112_v11, %v37_v14 }
  0x10   :  { %32 = vadd.xlane.f32.xlu0 %v31_v9  ;;  %v40_v16 = vsel %vm39_vm1, %v112_v11, %v38_v15 }
  0x7b   :  { %v30_v17 = vpop.xlane.xlu0 %29 }
  0x7c   :  { %v41_v18 = vmul.f32 %v40_v16, %v30_v17 }
  0x7e   :  { %v43_v19 = vsub.f32 %v25_v4, %v41_v18 }
  0x80   :  { %v45_v20 = vmul.f32 %v43_v19, %v43_v19 }
  0x82   :  { %v47_v21 = vsel %vm27_vm0, %v45_v20, 0.0 }
  0x83   :  { %48 = vadd.xlane.f32.xlu1 %v47_v21  ;;  %v33_v22 = vpop.xlane.xlu0 %32 }
  0x84   :  { %v42_v23 = vmul.f32 %v40_v16, %v33_v22 }
  0x86   :  { %v44_v24 = vsub.f32 %v26_v8, %v42_v23 }
  0x88   :  { %v46_v25 = vmul.f32 %v44_v24, %v44_v24 }
  0x8a   :  { %v50_v26 = vsel %vm27_vm0, %v46_v25, 0.0 }
  0x8b   :  { %51 = vadd.xlane.f32.xlu1 %v50_v26 }
  0xf6   :  { %v49_v27 = vpop.xlane.xlu1 %48 }
  0xf7   :  { %v53_v28 = vmul.f32 %v49_v27, %v40_v16 }
  0xf9   :  { %v55_v29 = vadd.f32 1e-12, %v53_v28 }
  0xfb   :  { %113 = vrsqrt.f32 %v55_v29  ;;  %vm63_vm3 = vweird.f32 %v55_v29 }
  0xfe   :  { %v52_v30 = vpop.xlane.xlu1 %51 }
  0xff   :  { %v54_v31 = vmul.f32 %v52_v30, %v40_v16 }
 0x101   :  { %v114_v32 = vpop.eup %113  ;;  %v56_v33 = vadd.f32 1e-12, %v54_v31 }
 0x102   :  { %v58_v34 = vmul.f32 %v114_v32, %v55_v29  ;;  %vm64_vm2 = vweird.f32 %v114_v32 }
 0x103   :  { %115 = vrsqrt.f32 %v56_v33  ;;  %vm65_vm4 = vmor %vm63_vm3, %vm64_vm2  ;;  %vm73_vm7 = vweird.f32 %v56_v33 }
 0x104   :  { %v59_v35 = vmul.f32 %v114_v32, %v58_v34 }
 0x106   :  { %v60_v36 = vmul.f32 0.5, %v59_v35 }
 0x108   :  { %v61_v37 = vsub.f32 1.5, %v60_v36 }
 0x109   :  { %v116_v38 = vpop.eup %115 }
 0x10a   :  { %v62_v39 = vmul.f32 %v114_v32, %v61_v37  ;;  %v68_v40 = vmul.f32 %v116_v38, %v56_v33  ;;  %vm74_vm5 = vweird.f32 %v116_v38 }
 0x10b   :  { %vm75_vm8 = vmor %vm73_vm7, %vm74_vm5 }
 0x10c   :  { %v66_v42 = vsel %vm65_vm4, %v114_v32, %v62_v39  ;;  %v69_v43 = vmul.f32 %v116_v38, %v68_v40 }
 0x10d   :  { %v77_v45 = vmul.f32 %v66_v42, %v43_v19 }
 0x10e   :  { %v70_v46 = vmul.f32 0.5, %v69_v43 }
 0x10f   :  { %v83_v47 = vmul.f32 %v109_v41, %v77_v45 }
 0x110   :  { %v71_v48 = vsub.f32 1.5, %v70_v46 }
 0x111   :  { %v89_v49 = vadd.f32 %v110_v44, %v83_v47 }
 0x112   :  { %v72_v50 = vmul.f32 %v116_v38, %v71_v48 }
 0x113   :  { %v91_v51 = vpack.c.bf16 %v89_v49, %v89_v49 }
 0x114   :  { %v76_v52 = vsel %vm75_vm8, %v116_v38, %v72_v50 }
 0x115   :  { %94 = vst.msk [vmem:[%s169_s4] sm:$0xf] %vm93_vm6, %v91_v51  ;;  %v78_v53 = vmul.f32 %v76_v52, %v44_v24 }
 0x117   :  { %v84_v54 = vmul.f32 %v109_v41, %v78_v53 }
 0x119   :  { %v90_v55 = vadd.f32 %v110_v44, %v84_v54 }
 0x11b   :  { %v92_v56 = vpack.c.bf16 %v90_v55, %v90_v55 }
 0x11d   :  { %95 = vst.msk [vmem:[%s169_s4 + $0x4] sm:$0xf] %vm93_vm6, %v92_v56 }

// kernel: bert_stance_forward.23
= control target key start
LH: loop header
LB: loop body
LE: loop exit
PB: predicated region body
PF: predicated region fallthrough
CT: control target
= control target key end

     0   :  { %vm19_vm0 = vcmask 261120   ;;  %v134_v1 = vmov 0.0   ;;  %vm63_vm1 = vcmask 523264   ;;  %vm99_vm2 = vcmask 257024   ;;  %s183_s1 = inlined_call_operand.vmem [shape: bf16[64,32], index: 1, kind: input, shape index: {}]   ;;  %s184_s2 = inlined_call_operand.vmem [shape: f32[1,32], index: 2, kind: input, shape index: {}]   ;;  %s185_s0 = inlined_call_operand.vmem [shape: bf16[16,64], index: 0, kind: input, shape index: {}]   ;;  %s186_s3 = inlined_call_operand.vmem [shape: bf16[16,32], index: 3, kind: output, shape index: {}]  }
   0x1   :  { %v131_v0 = vld [vmem:[%s183_s1 + $0x18] sm:$0xff]  ;;  %20 = vst.msk [vmem:[#allocation2] sm:$0xff] %vm19_vm0, %v134_v1  ;;  %v130_v2 = vld [vmem:[%s183_s1 + $0x10] sm:$0xff]  ;;  %v129_v3 = vld [vmem:[%s183_s1 + $0x8] sm:$0xff] }
   0x2   :  { %21 = vst.msk [vmem:[#allocation2 + $0x8] sm:$0xff] %vm19_vm0, %v134_v1  ;;  %71 = vmatpush.bf16.msra.mxu0 %v131_v0  ;;  %v128_v4 = vld [vmem:[%s183_s1] sm:$0xff] }
   0x3   :  { %v127_v5 = vld [vmem:[%s185_s0] sm:$0xff] }
   0x4   :  { %v133_v10 = vld [vmem:[%s184_s2] ss:$0 sm:$0xff] }
   0x6   :  { %72 = vmatpush.bf16.msra.mxu0 %v130_v2 }
   0x8   :  { %v22_v6 = vld [vmem:[#allocation2] sm:$0xff] }
   0x9   :  { %v23_v9 = vld [vmem:[#allocation2 + $0x8] sm:$0xff] }
   0xa   :  { %73 = vmatpush.bf16.msra.mxu0 %v129_v3 }
   0xe   :  { %74 = vmatpush.bf16.msra.mxu0 %v128_v4 }
  0x11   :  { %126 = vmatmul.msk.bf16.vlgmr.msra.gmra.mxu0 %vm63_vm1, %v127_v5 }
  0x8e   :  { %v76_v7 = vpop.f32.mrf.mxu0 }
  0x8f   :  { %v81_v8 = vadd.f32 %v76_v7, %v22_v6 }
  0x91   :  { %84 = vst.msk [vmem:[#allocation2] sm:$0xff] %vm19_vm0, %v81_v8 }
  0x96   :  { %v78_v11 = vpop.f32.mrf.mxu0 }
  0x97   :  { %v82_v12 = vadd.f32 %v78_v11, %v23_v9 }
  0x98   :  { %v89_v13 = vld [vmem:[#allocation2] sm:$0xff] }
  0x99   :  { %v95_v14 = vadd.f32 %v133_v10, %v89_v13  ;;  %85 = vst.msk [vmem:[#allocation2 + $0x8] sm:$0xff] %vm19_vm0, %v82_v12 }
  0x9b   :  { %v97_v15 = vpack.c.bf16 %v95_v14, %v95_v14 }
  0x9d   :  { %100 = vst.msk [vmem:[%s186_s3] sm:$0xf] %vm99_vm2, %v97_v15 }
  0xa0   :  { %v90_v16 = vld [vmem:[#allocation2 + $0x8] sm:$0xff] }
  0xa1   :  { %v96_v17 = vadd.f32 %v133_v10, %v90_v16 }
  0xa3   :  { %v98_v18 = vpack.c.bf16 %v96_v17, %v96_v17 }
  0xa5   :  { %101 = vst.msk [vmem:[%s186_s3 + $0x4] sm:$0xf] %vm99_vm2, %v98_v18 }

// kernel: bert_stance_forward.32
= control target key start
LH: loop header
LB: loop body
LE: loop exit
PB: predicated region body
PF: predicated region fallthrough
CT: control target
= control target key end

     0   :  { %vm19_vm0 = vcmask 254976   ;;  %v89_v1 = vmov 0.0   ;;  %vm39_vm1 = vcmask 261120   ;;  %s128_s1 = inlined_call_operand.vmem [shape: bf16[32,32], index: 1, kind: input, shape index: {}]   ;;  %s129_s2 = inlined_call_operand.vmem [shape: f32[1,32], index: 2, kind: input, shape index: {}]   ;;  %s130_s0 = inlined_call_operand.vmem [shape: bf16[2,32], index: 0, kind: input, shape index: {}]   ;;  %s131_s3 = inlined_call_operand.vmem [shape: f32[2,32], index: 3, kind: output, shape index: {}]  }
   0x1   :  { %v84_v0 = vld [vmem:[%s128_s1 + $0x8] sm:$0xff]  ;;  %20 = vst.msk [vmem:[#allocation2] sm:$0x3] %vm19_vm0, %v89_v1  ;;  %v83_v2 = vld [vmem:[%s128_s1] sm:$0xff] }
   0x2   :  { %49 = vmatpush.bf16.msra.mxu0 %v84_v0  ;;  %v22_v3 = vld [vmem:[%s130_s0] sm:$0x1] }
   0x3   :  { %v86_v7 = vld [vmem:[%s129_s2] ss:$0 sm:$0xff] }
   0x6   :  { %50 = vmatpush.bf16.msra.mxu0 %v83_v2 }
   0x8   :  { %v21_v4 = vld [vmem:[#allocation2] sm:$0x3] }
   0x9   :  { %82 = vmatmul.msk.bf16.vlgmr.msra.gmra.mxu0 %vm39_vm1, %v22_v3 }
  0x86   :  { %v52_v5 = vpop.f32.mrf.mxu0 }
  0x87   :  { %v56_v6 = vadd.f32 %v52_v5, %v21_v4 }
  0x89   :  { %58 = vst.msk [vmem:[#allocation2] sm:$0x3] %vm19_vm0, %v56_v6 }
  0x8e   :  { %v54_v8 = vpop.f32.mrf.mxu0 }
  0x90   :  { %v62_v9 = vld [vmem:[#allocation2] sm:$0x3] }
  0x91   :  { %v67_v10 = vadd.f32 %v86_v7, %v62_v9 }
  0x93   :  { %87 = vtanh.f32 %v67_v10 }
  0x99   :  { %v88_v11 = vpop.eup %87 }
  0x9a   :  { %69 = vst.msk [vmem:[%s131_s3] sm:$0x3] %vm19_vm0, %v88_v11 }

// kernel: bert_stance_forward.22
= control target key start
LH: loop header
LB: loop body
LE: loop exit
PB: predicated region body
PF: predicated region fallthrough
CT: control target
= control target key end

     0   :  { %vm19_vm0 = vcmask 523264   ;;  %v130_v1 = vmov 0.0   ;;  %vm47_vm1 = vcmask 261120   ;;  %vm101_vm2 = vcmask 519168   ;;  %s173_s1 = inlined_call_operand.vmem [shape: bf16[32,64], index: 1, kind: input, shape index: {}]   ;;  %s174_s2 = inlined_call_operand.vmem [shape: f32[1,64], index: 2, kind: input, shape index: {}]   ;;  %s175_s0 = inlined_call_operand.vmem [shape: bf16[16,32], index: 0, kind: input, shape index: {}]   ;;  %s176_s3 = inlined_call_operand.vmem [shape: bf16[16,64], index: 3, kind: output, shape index: {}]  }
   0x1   :  { %v123_v0 = vld [vmem:[%s173_s1 + $0x8] sm:$0xff]  ;;  %20 = vst.msk [vmem:[#allocation2] sm:$0xff] %vm19_vm0, %v130_v1  ;;  %v122_v2 = vld [vmem:[%s173_s1] sm:$0xff] }
   0x2   :  { %21 = vst.msk [vmem:[#allocation2 + $0x8] sm:$0xff] %vm19_vm0, %v130_v1  ;;  %57 = vmatpush.bf16.msra.mxu0 %v123_v0  ;;  %v121_v3 = vld [vmem:[%s175_s0] sm:$0xff] }
   0x3   :  { %v125_v8 = vld [vmem:[%s174_s2] ss:$0 sm:$0xff] }
   0x6   :  { %58 = vmatpush.bf16.msra.mxu0 %v122_v2 }
   0x8   :  { %v22_v4 = vld [vmem:[#allocation2] sm:$0xff] }
   0x9   :  { %120 = vmatmul.msk.bf16.vlgmr.msra.gmra.mxu0 %vm47_vm1, %v121_v3  ;;  %v23_v7 = vld [vmem:[#allocation2 + $0x8] sm:$0xff] }
  0x86   :  { %v60_v5 = vpop.f32.mrf.mxu0 }
  0x87   :  { %v65_v6 = vadd.f32 %v60_v5, %v22_v4 }
  0x89   :  { %68 = vst.msk [vmem:[#allocation2] sm:$0xff] %vm19_vm0, %v65_v6 }
  0x8e   :  { %v62_v9 = vpop.f32.mrf.mxu0 }
  0x8f   :  { %v66_v10 = vadd.f32 %v62_v9, %v23_v7 }
  0x90   :  { %v73_v11 = vld [vmem:[#allocation2] sm:$0xff] }
  0x91   :  { %v79_v12 = vadd.f32 %v125_v8, %v73_v11  ;;  %69 = vst.msk [vmem:[#allocation2 + $0x8] sm:$0xff] %vm19_vm0, %v66_v10 }
  0x93   :  { %v83_v13 = vmul.f32 0.044715, %v79_v12  ;;  %v81_v26 = vmul.f32 0.5, %v79_v12 }
  0x95   :  { %v85_v14 = vmul.f32 %v83_v13, %v79_v12 }
  0x97   :  { %v87_v15 = vmul.f32 %v85_v14, %v79_v12 }
  0x98   :  { %v74_v16 = vld [vmem:[#allocation2 + $0x8] sm:$0xff] }
  0x99   :  { %v89_v17 = vadd.f32 %v87_v15, %v79_v12  ;;  %v80_v18 = vadd.f32 %v125_v8, %v74_v16 }
  0x9b   :  { %v91_v19 = vmul.f32 0.7978846, %v89_v17  ;;  %v84_v20 = vmul.f32 0.044715, %v80_v18  ;;  %v82_v31 = vmul.f32 0.5, %v80_v18 }
  0x9d   :  { %126 = vtanh.f32 %v91_v19  ;;  %v86_v21 = vmul.f32 %v84_v20, %v80_v18 }
  0x9f   :  { %v88_v22 = vmul.f32 %v86_v21, %v80_v18 }
  0xa1   :  { %v90_v23 = vadd.f32 %v88_v22, %v80_v18 }
  0xa3   :  { %v127_v24 = vpop.eup %126  ;;  %v92_v25 = vmul.f32 0.7978846, %v90_v23 }
  0xa4   :  { %v95_v27 = vadd.f32 1.0, %v127_v24 }
  0xa5   :  { %128 = vtanh.f32 %v92_v25 }
  0xa6   :  { %v97_v28 = vmul.f32 %v95_v27, %v81_v26 }
  0xa8   :  { %v99_v29 = vpack.c.bf16 %v97_v28, %v97_v28 }
  0xaa   :  { %102 = vst.msk [vmem:[%s176_s3] sm:$0xf] %vm101_vm2, %v99_v29 }
  0xab   :  { %v129_v30 = vpop.eup %128 }
  0xac   :  { %v96_v32 = vadd.f32 1.0, %v129_v30 }
  0xae   :  { %v98_v33 = vmul.f32 %v96_v32, %v82_v31 }
  0xb0   :  { %v100_v34 = vpack.c.bf16 %v98_v33, %v98_v33 }
  0xb2   :  { %103 = vst.msk [vmem:[%s176_s3 + $0x4] sm:$0xf] %vm101_vm2, %v100_v34 }

// kernel: bert_stance_forward.33
= control target key start
LH: loop header
LB: loop body
LE: loop exit
PB: predicated region body
PF: predicated region fallthrough
CT: control target
= control target key end

     0   :  { %v124_v1 = vmov 0.0   ;;  %s161_s0 = inlined_call_operand.vmem [shape: bf16[2,32], index: 0, kind: input, shape index: {}]   ;;  %s162_s1 = inlined_call_operand.vmem [shape: bf16[32,128], index: 1, kind: input, shape index: {}]   ;;  %s163_s2 = inlined_call_operand.vmem [shape: f32[1,128], index: 2, kind: input, shape index: {}]   ;;  %s164_s3 = inlined_call_operand.hbm [shape: f32[2,128], index: 3, kind: output, shape index: {}]  }
   0x1   :  { %v94_v0 = vld [vmem:[%s162_s1 + $0x8] sm:$0xff]  ;;  %20 = vst [vmem:[#allocation2] sm:$0x3] %v124_v1 }
   0x2   :  { %8 = vsyncpa [#allocation4], 0  ;;  %49 = vmatpush.bf16.msra.mxu0 %v94_v0  ;;  %v93_v2 = vld [vmem:[%s162_s1] sm:$0xff]  ;;  %vm39_vm0 = vcmask 261120   ;;  %s125_s20 = smov [#allocation3]   ;;  %s75_s23 = sshll.u32 %s164_s3, 4  ;;  %s76_s23 = int_to_ptr.hbm [resolvable:$true] %s75_s23 }
   0x3   :  { %v22_v3 = vld [vmem:[%s161_s0] sm:$0x1]  ;;  %s73_s21 = sshll.u32 %s125_s20, 4  ;;  %s74_s21 = int_to_ptr.vmem [resolvable:$true] %s73_s21 }
   0x4   :  { %v97_v7 = vld [vmem:[%s163_s2] ss:$0 sm:$0xff] }
   0x6   :  { %50 = vmatpush.bf16.msra.mxu0 %v93_v2 }
   0x8   :  { %v21_v4 = vld [vmem:[#allocation2] sm:$0x3] }
   0x9   :  { %92 = vmatmul.msk.bf16.vlgmr.msra.gmra.mxu0 %vm39_vm0, %v22_v3 }
  0x86   :  { %v52_v5 = vpop.f32.mrf.mxu0 }
  0x87   :  { %v56_v6 = vadd.f32 %v52_v5, %v21_v4 }
  0x89   :  { %57 = vst [vmem:[#allocation2] sm:$0x3] %v56_v6 }
  0x8e   :  { %v54_v8 = vpop.f32.mrf.mxu0 }
  0x90   :  { %v61_v9 = vld [vmem:[#allocation2] sm:$0x3] }
  0x91   :  { %v66_v10 = vadd.f32 %v97_v7, %v61_v9 }
  0x93   :  { %67 = vst [vmem:[#allocation3] sm:$0x3] %v66_v10 }
  0x94   :  { %78 = dma.vmem_to_hbm [thread:$0]  %s74_s21, 32, %s76_s23, [#allocation4]  }
  0x95   :  { %122 = dma.done.wait [#allocation4], 32  }
  0x96   :  { %123 = vsyncadd [#allocation4], 4294967264 }
  0x97   :  { %83 = vsyncpa [#allocation4], 1 }

</bundles_post_ra>
